<compile_context>
chip_gen: v7x
topology: tpu7x:2x2x1
jax: 0.10.0
libtpu: 0.0.40
codegen_flags: <defaults>
</compile_context>

<pallas_src>
import numpy as np
import jax
import jax.numpy as jnp
from jax.experimental import pallas as pl
from jax.experimental.pallas import tpu as pltpu

C = 5                  # in_channels
K = 10                 # conv kernel size
LIN = 397              # input length: (397 - 10 + 1) = 388; 388 // 4 = 97 = Linear in_features
LOUT = LIN - K + 1     # 388
POOL = 4
P = LOUT // POOL       # 97
H1 = 10
GROUP_STRIDE = 128     # lane-aligned column offset per pooling phase
TCOLS = POOL * GROUP_STRIDE   # 512
CL = C * LIN           # 1985


def _round_up(n, m):
    return ((n + m - 1) // m) * m


def binned_conv_kernel(x_ref, t_ref, cb_ref, wf_ref, bf_ref, out_ref):
    # Conv1d (out_channels=1) as a Toeplitz matmul: bf16 operands, f32 accumulate.
    z = jnp.dot(x_ref[...], t_ref[...],
                preferred_element_type=jnp.float32)          # (TB, 512) f32
    z = jnp.maximum(z + cb_ref[...], 0.0)                    # +conv bias, ReLU
    # MaxPool1d(4): the 4 pooling phases sit in 128-lane-aligned column groups,
    # so the pool is an elementwise max of four whole-vreg lane slices.
    p0 = z[:, 0 * GROUP_STRIDE:1 * GROUP_STRIDE]
    p1 = z[:, 1 * GROUP_STRIDE:2 * GROUP_STRIDE]
    p2 = z[:, 2 * GROUP_STRIDE:3 * GROUP_STRIDE]
    p3 = z[:, 3 * GROUP_STRIDE:4 * GROUP_STRIDE]
    pooled = jnp.maximum(jnp.maximum(p0, p1), jnp.maximum(p2, p3))  # (TB, 128)
    # Fused Linear(97->10)->Linear(10->1)  ==  Linear(97->1) (no ReLU between).
    # Weight rows 97..127 are zero, so the pool's junk lanes contribute nothing.
    y = jnp.sum(pooled * wf_ref[...], axis=1, keepdims=True) + bf_ref[...]
    out_ref[...] = y                                          # (TB, 1)


def conv_toeplitz(conv_w):
    """Expand Conv1d weights (1, C, K) into a (C*LIN, 512) Toeplitz matrix whose
    columns are permuted so pooling phase r, output position p maps to column
    r*128 + p (lane-aligned groups). Host-side, one-time cost."""
    w = np.asarray(conv_w, np.float32)[0]          # (C, K)
    T = np.zeros((CL, TCOLS), np.float32)
    for c in range(C):
        for j in range(LOUT):
            p_idx, r_idx = j // POOL, j % POOL
            col = r_idx * GROUP_STRIDE + p_idx
            T[c * LIN + j: c * LIN + j + K, col] = w[c]
    return jnp.asarray(T, jnp.bfloat16)


def build_params(key):
    kc, kcb, k1, k1b, k2, k2b = jax.random.split(key, 6)
    conv_w = jax.random.normal(kc, (1, C, K), jnp.float32) * 0.1
    conv_b = jax.random.normal(kcb, (1,), jnp.float32) * 0.1
    w1 = jax.random.normal(k1, (H1, P), jnp.float32) * 0.1
    b1 = jax.random.normal(k1b, (H1,), jnp.float32) * 0.1
    w2 = jax.random.normal(k2, (1, H1), jnp.float32) * 0.1
    b2 = jax.random.normal(k2b, (1,), jnp.float32) * 0.1
    return conv_w, conv_b, w1, b1, w2, b2


def prepare_inference_params(params):
    """One-time prep (hoisted out of the forward path, keeps forward jittable):
    Toeplitz conv matrix (bf16), conv-bias row, fused+padded linear weights."""
    conv_w, conv_b, w1, b1, w2, b2 = params
    T = conv_toeplitz(conv_w)                                            # (1985, 512) bf16
    cb = jnp.full((1, TCOLS), conv_b.astype(jnp.float32)[0], jnp.float32)
    # Fold Linear(97->10) -> Linear(10->1) (no nonlinearity between):
    #   y = pooled @ (w2 @ w1).T + (w2 @ b1 + b2)
    wv = (w2.astype(jnp.float32) @ w1.astype(jnp.float32))[0]            # (97,)
    wf = jnp.zeros((1, GROUP_STRIDE), jnp.float32).at[0, :P].set(wv)     # (1, 128), rows 97..127 zero
    bf = (w2.astype(jnp.float32) @ b1.astype(jnp.float32)
          + b2.astype(jnp.float32)).reshape(1, 1)                        # (1, 1)
    return T, cb, wf, bf


def binned_conv_forward(x, prepared):
    T, cb, wf, bf = prepared
    if x.ndim < 3:                       # mirrors `if len(x.shape) < 3: unsqueeze(0)`
        x = x[None]
    B = x.shape[0]
    assert x.shape[1] == C and x.shape[2] == LIN

    # Batch tile: multiple of 16 (bf16 sublane packing), capped so the working
    # set (double-buffered bf16 x + resident 2 MB bf16 T + f32 z/pooled temps)
    # stays well inside v5e's 16 MiB scoped default and v7x's 64 MiB physical VMEM.
    TB = min(512, _round_up(B, 16))
    B_pad = _round_up(B, TB)

    x_flat = x.reshape(B, CL)
    if B_pad != B:
        x_flat = jnp.pad(x_flat, ((0, B_pad - B), (0, 0)))
    x_flat = x_flat.astype(jnp.bfloat16)

    out = pl.pallas_call(
        binned_conv_kernel,
        out_shape=jax.ShapeDtypeStruct((B_pad, 1), jnp.float32),
        grid=(B_pad // TB,),
        in_specs=[
            pl.BlockSpec((TB, CL), lambda i: (i, 0)),            # x: streamed per batch tile
            pl.BlockSpec((CL, TCOLS), lambda i: (0, 0)),         # Toeplitz: resident
            pl.BlockSpec((1, TCOLS), lambda i: (0, 0)),          # conv bias row: resident
            pl.BlockSpec((1, GROUP_STRIDE), lambda i: (0, 0)),   # fused linear weight: resident
            pl.BlockSpec((1, 1), lambda i: (0, 0)),              # fused linear bias: resident
        ],
        out_specs=pl.BlockSpec((TB, 1), lambda i: (i, 0)),
        compiler_params=pltpu.CompilerParams(
            dimension_semantics=("parallel",),       # v7x: shard batch tiles over 2 TCs
            vmem_limit_bytes=48 * 1024 * 1024,
        ),
    )(x_flat, T, cb, wf, bf)
    return out[:B, 0]                    # Flatten(0) -> shape (B,)


def reference_forward(x, params, emulate_bf16=False):
    """Pure-JAX reference reproducing the (effective) PyTorch graph.
    emulate_bf16=True casts x/conv weights to bf16 (matching the kernel's MXU
    operand precision) while keeping f32 math, for a tight numerical check."""
    conv_w, conv_b, w1, b1, w2, b2 = params
    if x.ndim < 3:
        x = x[None]
    xf = x.astype(jnp.float32)
    wc = conv_w.astype(jnp.float32)
    if emulate_bf16:
        xf = xf.astype(jnp.bfloat16).astype(jnp.float32)
        wc = wc.astype(jnp.bfloat16).astype(jnp.float32)
    z = jax.lax.conv_general_dilated(
        xf, wc, window_strides=(1,), padding="VALID",
        dimension_numbers=("NCH", "OIH", "NCH"),
        precision=jax.lax.Precision.HIGHEST) + conv_b[None, :, None]     # (B,1,388)
    z = jnp.maximum(z, 0.0)
    B = z.shape[0]
    z = z.reshape(B, 1, P, POOL).max(axis=-1)                            # (B,1,97)
    h = jnp.einsum("bcp,hp->bch", z, w1.astype(jnp.float32),
                   precision=jax.lax.Precision.HIGHEST) + b1             # (B,1,10)
    y = jnp.einsum("bch,oh->bco", h, w2.astype(jnp.float32),
                   precision=jax.lax.Precision.HIGHEST) + b2             # (B,1,1)
    return y.reshape(-1)


if __name__ == "__main__":
    key = jax.random.PRNGKey(0)
    kp, kx = jax.random.split(key)
    params = build_params(kp)
    prepared = prepare_inference_params(params)   # one-time host-side prep
    x = jax.random.normal(kx, (2, C, LIN), jnp.float32)   # (batch=2, channels=5, length=397)

    fwd = jax.jit(binned_conv_forward)
    out = jax.block_until_ready(fwd(x, prepared))

    # Tight check against a reference that matches the kernel's bf16 operand precision.
    ref_bf16 = jax.block_until_ready(reference_forward(x, params, emulate_bf16=True))
    np.testing.assert_allclose(np.asarray(out), np.asarray(ref_bf16), rtol=1e-3, atol=1e-3)
    # Looser sanity check against the full-f32 reference.
    ref_f32 = jax.block_until_ready(reference_forward(x, params, emulate_bf16=False))
    np.testing.assert_allclose(np.asarray(out), np.asarray(ref_f32), rtol=5e-2, atol=5e-2)

    assert out.shape == (2,)
    print("KERNEL_OK")
</pallas_src>

<mosaic_0001>
module attributes {stable_mosaic.version = 11 : i64} {
  func.func @binned_conv_kernel(%arg0: i32, %arg1: memref<16x1985xbf16, #tpu.memory_space<vmem>>, %arg2: memref<1985x512xbf16, #tpu.memory_space<vmem>>, %arg3: memref<1x512xf32, #tpu.memory_space<vmem>>, %arg4: memref<1x128xf32, #tpu.memory_space<vmem>>, %arg5: memref<1x1xf32, #tpu.memory_space<vmem>>, %arg6: memref<16x1xf32, #tpu.memory_space<vmem>>) attributes {dimension_semantics = [#tpu.dimension_semantics<parallel>], iteration_bounds = array<i64: 1>, scalar_prefetch = 0 : i64, scratch_operands = 0 : i64, tpu.core_type = #tpu.core_type<tc>, window_params = [{transform_indices = @transform_0, window_bounds = array<i64: 16, 1985>}, {pipeline_mode = #tpu.pipeline_mode<synchronous>, transform_indices = @transform_1, window_bounds = array<i64: 1985, 512>}, {pipeline_mode = #tpu.pipeline_mode<synchronous>, transform_indices = @transform_2, window_bounds = array<i64: 1, 512>}, {pipeline_mode = #tpu.pipeline_mode<synchronous>, transform_indices = @transform_3, window_bounds = array<i64: 1, 128>}, {pipeline_mode = #tpu.pipeline_mode<synchronous>, transform_indices = @transform_4, window_bounds = array<i64: 1, 1>}, {transform_indices = @transform_5, window_bounds = array<i64: 16, 1>}]} {
    %c0 = arith.constant 0 : index
    %c0_0 = arith.constant 0 : index
    %0 = vector.load %arg1[%c0, %c0_0] : memref<16x1985xbf16, #tpu.memory_space<vmem>>, vector<16x1985xbf16>
    %c0_1 = arith.constant 0 : index
    %c0_2 = arith.constant 0 : index
    %1 = vector.load %arg2[%c0_1, %c0_2] : memref<1985x512xbf16, #tpu.memory_space<vmem>>, vector<1985x512xbf16>
    %cst = arith.constant dense<0.000000e+00> : vector<16x512xf32>
    %2 = tpu.matmul %0, %1, %cst {dimension_numbers = #tpu.dot_dimension_numbers<[1], [0], [0], [1], [0, 0, 1, 1], [], []>} : vector<16x1985xbf16>, vector<1985x512xbf16>, vector<16x512xf32> -> vector<16x512xf32>
    %c0_3 = arith.constant 0 : index
    %c0_4 = arith.constant 0 : index
    %3 = vector.load %arg3[%c0_3, %c0_4] : memref<1x512xf32, #tpu.memory_space<vmem>>, vector<1x512xf32>
    %4 = vector.broadcast %3 : vector<1x512xf32> to vector<16x512xf32>
    %5 = arith.addf %2, %4 : vector<16x512xf32>
    %cst_5 = arith.constant 0.000000e+00 : f32
    %6 = vector.broadcast %cst_5 : f32 to vector<16x512xf32>
    %7 = arith.maximumf %5, %6 : vector<16x512xf32>
    %8 = vector.extract_strided_slice %7 {offsets = [0, 0], sizes = [16, 128], strides = [1, 1]} : vector<16x512xf32> to vector<16x128xf32>
    %9 = vector.extract_strided_slice %7 {offsets = [0, 128], sizes = [16, 128], strides = [1, 1]} : vector<16x512xf32> to vector<16x128xf32>
    %10 = vector.extract_strided_slice %7 {offsets = [0, 256], sizes = [16, 128], strides = [1, 1]} : vector<16x512xf32> to vector<16x128xf32>
    %11 = vector.extract_strided_slice %7 {offsets = [0, 384], sizes = [16, 128], strides = [1, 1]} : vector<16x512xf32> to vector<16x128xf32>
    %12 = arith.maximumf %8, %9 : vector<16x128xf32>
    %13 = arith.maximumf %10, %11 : vector<16x128xf32>
    %14 = arith.maximumf %12, %13 : vector<16x128xf32>
    %c0_6 = arith.constant 0 : index
    %c0_7 = arith.constant 0 : index
    %15 = vector.load %arg4[%c0_6, %c0_7] : memref<1x128xf32, #tpu.memory_space<vmem>>, vector<1x128xf32>
    %16 = vector.broadcast %15 : vector<1x128xf32> to vector<16x128xf32>
    %17 = arith.mulf %14, %16 : vector<16x128xf32>
    %cst_8 = arith.constant dense<0.000000e+00> : vector<16xf32>
    %18 = vector.multi_reduction <add>, %17, %cst_8 [1] : vector<16x128xf32> to vector<16xf32>
    %19 = vector.shape_cast %18 : vector<16xf32> to vector<16x1xf32>
    %c0_9 = arith.constant 0 : index
    %c0_10 = arith.constant 0 : index
    %20 = vector.load %arg5[%c0_9, %c0_10] : memref<1x1xf32, #tpu.memory_space<vmem>>, vector<1x1xf32>
    %21 = vector.broadcast %20 : vector<1x1xf32> to vector<16x1xf32>
    %22 = arith.addf %19, %21 : vector<16x1xf32>
    %c0_11 = arith.constant 0 : index
    %c0_12 = arith.constant 0 : index
    %23 = vector.load %arg6[%c0_11, %c0_12] : memref<16x1xf32, #tpu.memory_space<vmem>>, vector<16x1xf32>
    tpu.vector_store %arg6[%c0_11, %c0_12], %22 {strides = array<i32>} : memref<16x1xf32, #tpu.memory_space<vmem>>, vector<16x1xf32>,
    return
  }
  func.func @transform_0(%arg0: i32) -> (i32, i32) {
    %c0_i32 = arith.constant 0 : i32
    %c0_i32_0 = arith.constant 0 : i32
    return %arg0, %c0_i32 : i32, i32
  }
  func.func @transform_1(%arg0: i32) -> (i32, i32) {
    %c0_i32 = arith.constant 0 : i32
    %c0_i32_0 = arith.constant 0 : i32
    %c0_i32_1 = arith.constant 0 : i32
    return %c0_i32, %c0_i32_0 : i32, i32
  }
  func.func @transform_2(%arg0: i32) -> (i32, i32) {
    %c0_i32 = arith.constant 0 : i32
    %c0_i32_0 = arith.constant 0 : i32
    %c0_i32_1 = arith.constant 0 : i32
    return %c0_i32, %c0_i32_0 : i32, i32
  }
  func.func @transform_3(%arg0: i32) -> (i32, i32) {
    %c0_i32 = arith.constant 0 : i32
    %c0_i32_0 = arith.constant 0 : i32
    %c0_i32_1 = arith.constant 0 : i32
    return %c0_i32, %c0_i32_0 : i32, i32
  }
  func.func @transform_4(%arg0: i32) -> (i32, i32) {
    %c0_i32 = arith.constant 0 : i32
    %c0_i32_0 = arith.constant 0 : i32
    %c0_i32_1 = arith.constant 0 : i32
    return %c0_i32, %c0_i32_0 : i32, i32
  }
  func.func @transform_5(%arg0: i32) -> (i32, i32) {
    %c0_i32 = arith.constant 0 : i32
    %c0_i32_0 = arith.constant 0 : i32
    return %arg0, %c0_i32 : i32, i32
  }
}

</mosaic_0001>

<bundles_post_ra>
// kernel: binned_conv_forward.1
= control target key start
LH: loop header
LB: loop body
LE: loop exit
PB: predicated region body
PF: predicated region fallthrough
CT: control target
= control target key end

     0   :  { %s5517_s0 = inlined_call_operand.vmem [shape: bf16[16,1985], index: 0, kind: input, shape index: {}]   ;;  %s5518_s1 = inlined_call_operand.hbm [shape: bf16[1985,512], index: 1, kind: input, shape index: {}]   ;;  %s5519_s2 = inlined_call_operand.hbm [shape: f32[1,512], index: 2, kind: input, shape index: {}]   ;;  %s5520_s3 = inlined_call_operand.hbm [shape: f32[1,128], index: 3, kind: input, shape index: {}]   ;;  %s5521_s4 = inlined_call_operand.<no memory space> [shape: f32[1,1], index: 4, kind: input, shape index: {}]   ;;  %s5522_s5 = inlined_call_operand.vmem [shape: f32[16,1], index: 5, kind: output, shape index: {}]  }
   0x1   :  { %v10_v0 = vstv %s5521_s4 }
   0x2   :  { %11 = vst [vmem:[#allocation2] sm:$0x1] %v10_v0 }
   0x3   :  { %12 = vsyncpa [#allocation4], 0 }
   0x4   :  { %13 = vsyncpa [#allocation6], 0  ;;  %s5325_s20 = smov [#allocation5]   ;;  %s5326_s22 = smov [#allocation3]  }
   0x5   :  { %s34_s21 = sshll.u32 %s5325_s20, 4  ;;  %s21_s23 = sshll.u32 %s5326_s22, 4  ;;  %s35_s21 = int_to_ptr.vmem [resolvable:$true] %s34_s21  ;;  %s5364_s23 = int_to_ptr.vmem [resolvable:$true] %s21_s23 }
   0x6   :  { %s5255_s26 = scalar_lea.hbm %s5519_s2, 64 }
   0x7   :  { %p5256_p0 = scmp.ne.s32.totalorder %s5519_s2, %s5255_s26  ;;  %p5259_p1 = scmp.lt.u32.totalorder %s5255_s26, %s5519_s2 }
   0x9   :  { %p5261_p2 = pnand %p5259_p1, %p5256_p0 }
   0xb   :  { %5264 = shalt.err (!%p5261_p2)
}
   0xc   :  { %s5265_s30 = scalar_lea.vmem %s35_s21, 64  ;;  %p5270_p4 = scmp.lt.s32.totalorder %s35_s21, %s35_s21 }
   0xd   :  { %p5266_p3 = scmp.ne.s32.totalorder %s35_s21, %s5265_s30  ;;  %p5271_p5 = scmp.lt.s32.totalorder %s5265_s30, %s5265_s30 }
   0xf   :  { %p5272_p6 = por %p5271_p5, %p5270_p4 }
  0x11   :  { %p5273_p7 = pnand %p5272_p6, %p5266_p3 }
  0x13   :  { %5276 = shalt.err (!%p5273_p7)
}
  0x14   :  { %37 = dma.hbm_to_vmem [thread:$0]  %s5519_s2, 64, %s35_s21, [#allocation6]  }
  0x15   :  { %s5277_s10 = scalar_lea.hbm %s5518_s1, 63744 }
  0x16   :  { %p5278_p8 = scmp.ne.s32.totalorder %s5518_s1, %s5277_s10  ;;  %p5281_p9 = scmp.lt.u32.totalorder %s5277_s10, %s5518_s1 }
  0x18   :  { %p5283_p10 = pnand %p5281_p9, %p5278_p8 }
  0x1a   :  { %5286 = shalt.err (!%p5283_p10)
}
  0x1b   :  { %s5287_s15 = scalar_lea.vmem %s5364_s23, 63744  ;;  %p5292_p12 = scmp.lt.s32.totalorder %s5364_s23, %s5364_s23 }
  0x1c   :  { %p5288_p11 = scmp.ne.s32.totalorder %s5364_s23, %s5287_s15  ;;  %p5293_p13 = scmp.lt.s32.totalorder %s5287_s15, %s5287_s15 }
  0x1e   :  { %p5294_p0 = por %p5293_p13, %p5292_p12 }
  0x20   :  { %p5295_p1 = pnand %p5294_p0, %p5288_p11 }
  0x22   :  { %5298 = shalt.err (!%p5295_p1)
}
  0x23   :  { %s5327_s2 = smov 256   ;;  %s5328_s16 = smov 16  }
  0x24   :  { %27 = dma.hbm_to_vmem [thread:$0]  %s5518_s1, 63744, %s5364_s23, [#allocation4], %s5327_s2, %s5327_s2, %s5328_s16  }
  0x25   :  { %s5329_s19 = smov [#allocation7]   ;;  %s5299_s24 = scalar_lea.hbm %s5520_s3, 16 }
  0x26   :  { %s44_s20 = sshll.u32 %s5329_s19, 4  ;;  %p5300_p2 = scmp.ne.s32.totalorder %s5520_s3, %s5299_s24  ;;  %s45_s20 = int_to_ptr.vmem [resolvable:$true] %s44_s20 }
  0x27   :  { %p5303_p3 = scmp.lt.u32.totalorder %s5299_s24, %s5520_s3 }
  0x29   :  { %p5305_p4 = pnand %p5303_p3, %p5300_p2 }
  0x2b   :  { %5308 = shalt.err (!%p5305_p4)
}
  0x2c   :  { %s5309_s29 = scalar_lea.vmem %s45_s20, 16  ;;  %s5313_s1 = scalar_lea.vmem %s45_s20, 32 }
  0x2d   :  { %p5310_p5 = scmp.ne.s32.totalorder %s45_s20, %s5309_s29  ;;  %p5314_p6 = scmp.lt.s32.totalorder %s45_s20, %s45_s20 }
  0x2e   :  { %p5315_p7 = scmp.lt.s32.totalorder %s5313_s1, %s5309_s29 }
  0x30   :  { %p5316_p8 = por %p5315_p7, %p5314_p6 }
  0x32   :  { %p5317_p9 = pnand %p5316_p8, %p5310_p5 }
  0x34   :  { %5320 = shalt.err (!%p5317_p9)
}
  0x35   :  { %47 = dma.hbm_to_vmem [thread:$0]  %s5520_s3, 16, %s45_s20, [#allocation6]  }
  0x36   :  { %5321 = dma.done.wait [#allocation4], 63744  }
  0x37   :  { %5322 = vsyncadd [#allocation4], 4294903552 }
  0x38   :  { %5323 = dma.done.wait [#allocation6], 80  }
  0x39   :  { %5324 = vsyncadd [#allocation6], 4294967216  ;;  %v4507_v1 = vld [vmem:[#allocation3 + $0x4] ss:$16 sps:$4 sm:$0xff]   ;;  %v4509_v2 = vld [vmem:[#allocation3 + $0xc] ss:$16 sps:$4 sm:$0xff]  }
  0x3a   :  { %3184 = vmatprep.subr.bf16.mxu0 %v4507_v1  ;;  %v4511_v3 = vld [vmem:[#allocation3] ss:$16 sps:$4 sm:$0xff]   ;;  %v4512_v4 = vld [vmem:[#allocation3 + $0x8] ss:$16 sps:$4 sm:$0xff]   ;;  %3528 = vmatprep.subr.bf16.mxu1 %v4509_v2  ;;  %v4513_v5 = vld [vmem:[#allocation3 + $0x24] ss:$16 sps:$4 sm:$0xff]  }
  0x3b   :  { %3185 = vmatpush1.bf16.msra.mxu0 %v4511_v3  ;;  %3529 = vmatpush1.bf16.msra.mxu1 %v4512_v4  ;;  %v4515_v6 = vld [vmem:[#allocation3 + $0x2c] ss:$16 sps:$4 sm:$0xff]   ;;  %v4517_v7 = vld [vmem:[#allocation3 + $0x20] ss:$16 sps:$4 sm:$0xff]   ;;  %v4518_v8 = vld [vmem:[#allocation3 + $0x28] ss:$16 sps:$4 sm:$0xff]  }
  0x3c   :  { %3186 = vmatprep.subr.bf16.mxu0 %v4513_v5  ;;  %3530 = vmatprep.subr.bf16.mxu1 %v4515_v6  ;;  %v4519_v9 = vld [vmem:[#allocation3 + $0x44] ss:$16 sps:$4 sm:$0xff]   ;;  %v4521_v10 = vld [vmem:[#allocation3 + $0x4c] ss:$16 sps:$4 sm:$0xff]   ;;  %v4523_v11 = vld [vmem:[#allocation3 + $0x40] ss:$16 sps:$4 sm:$0xff]  }
  0x3d   :  { %v4524_v12 = vld [vmem:[#allocation3 + $0x48] ss:$16 sps:$4 sm:$0xff]   ;;  %v4525_v13 = vld [vmem:[#allocation3 + $0x64] ss:$16 sps:$4 sm:$0xff]   ;;  %v4527_v14 = vld [vmem:[#allocation3 + $0x6c] ss:$16 sps:$4 sm:$0xff]  }
  0x3e   :  { %v4529_v15 = vld [vmem:[#allocation3 + $0x60] ss:$16 sps:$4 sm:$0xff]   ;;  %v4530_v16 = vld [vmem:[#allocation3 + $0x68] ss:$16 sps:$4 sm:$0xff]   ;;  %v4531_v17 = vld [vmem:[#allocation3 + $0x84] ss:$16 sps:$4 sm:$0xff]  }
  0x3f   :  { %3187 = vmatpush1.bf16.msra.mxu0 %v4517_v7  ;;  %3531 = vmatpush1.bf16.msra.mxu1 %v4518_v8  ;;  %v4533_v18 = vld [vmem:[#allocation3 + $0x8c] ss:$16 sps:$4 sm:$0xff]   ;;  %v4535_v19 = vld [vmem:[#allocation3 + $0x80] ss:$16 sps:$4 sm:$0xff]   ;;  %v4536_v20 = vld [vmem:[#allocation3 + $0x88] ss:$16 sps:$4 sm:$0xff]  }
  0x40   :  { %3188 = vmatprep.subr.bf16.mxu0 %v4519_v9  ;;  %3532 = vmatprep.subr.bf16.mxu1 %v4521_v10  ;;  %v4537_v21 = vld [vmem:[#allocation3 + $0xa4] ss:$16 sps:$4 sm:$0xff]   ;;  %v4539_v22 = vld [vmem:[#allocation3 + $0xac] ss:$16 sps:$4 sm:$0xff]   ;;  %v4541_v23 = vld [vmem:[#allocation3 + $0xa0] ss:$16 sps:$4 sm:$0xff]  }
  0x41   :  { %v4542_v24 = vld [vmem:[#allocation3 + $0xa8] ss:$16 sps:$4 sm:$0xff]   ;;  %v4543_v25 = vld [vmem:[#allocation3 + $0xc4] ss:$16 sps:$4 sm:$0xff]   ;;  %v4545_v26 = vld [vmem:[#allocation3 + $0xcc] ss:$16 sps:$4 sm:$0xff]  }
  0x42   :  { %v4547_v27 = vld [vmem:[#allocation3 + $0xc0] ss:$16 sps:$4 sm:$0xff]   ;;  %v4548_v28 = vld [vmem:[#allocation3 + $0xc8] ss:$16 sps:$4 sm:$0xff]   ;;  %v4549_v29 = vld [vmem:[#allocation3 + $0xe4] ss:$16 sps:$4 sm:$0xff]  }
  0x43   :  { %3189 = vmatpush1.bf16.msra.mxu0 %v4523_v11  ;;  %3533 = vmatpush1.bf16.msra.mxu1 %v4524_v12  ;;  %v4551_v30 = vld [vmem:[#allocation3 + $0xec] ss:$16 sps:$4 sm:$0xff]   ;;  %v4553_v31 = vld [vmem:[#allocation3 + $0xe0] ss:$16 sps:$4 sm:$0xff]   ;;  %v4554_v32 = vld [vmem:[#allocation3 + $0xe8] ss:$16 sps:$4 sm:$0xff]  }
  0x44   :  { %3190 = vmatprep.subr.bf16.mxu0 %v4525_v13  ;;  %3534 = vmatprep.subr.bf16.mxu1 %v4527_v14  ;;  %v4555_v33 = vld [vmem:[#allocation3 + $0x104] ss:$16 sps:$4 sm:$0xff]   ;;  %v4557_v34 = vld [vmem:[#allocation3 + $0x10c] ss:$16 sps:$4 sm:$0xff]   ;;  %v4559_v35 = vld [vmem:[#allocation3 + $0x100] ss:$16 sps:$4 sm:$0xff]  }
  0x45   :  { %v4560_v36 = vld [vmem:[#allocation3 + $0x108] ss:$16 sps:$4 sm:$0xff]   ;;  %v4561_v37 = vld [vmem:[#allocation3 + $0x124] ss:$16 sps:$4 sm:$0xff]   ;;  %v4563_v38 = vld [vmem:[#allocation3 + $0x12c] ss:$16 sps:$4 sm:$0xff]  }
  0x46   :  { %v4565_v39 = vld [vmem:[#allocation3 + $0x120] ss:$16 sps:$4 sm:$0xff]   ;;  %v4566_v40 = vld [vmem:[#allocation3 + $0x128] ss:$16 sps:$4 sm:$0xff]   ;;  %v4567_v41 = vld [vmem:[#allocation3 + $0x144] ss:$16 sps:$4 sm:$0xff]  }
  0x47   :  { %3191 = vmatpush1.bf16.msra.mxu0 %v4529_v15  ;;  %3535 = vmatpush1.bf16.msra.mxu1 %v4530_v16  ;;  %v4569_v42 = vld [vmem:[#allocation3 + $0x14c] ss:$16 sps:$4 sm:$0xff]   ;;  %v4571_v43 = vld [vmem:[#allocation3 + $0x140] ss:$16 sps:$4 sm:$0xff]   ;;  %v4572_v44 = vld [vmem:[#allocation3 + $0x148] ss:$16 sps:$4 sm:$0xff]  }
  0x48   :  { %3192 = vmatprep.subr.bf16.mxu0 %v4531_v17  ;;  %3536 = vmatprep.subr.bf16.mxu1 %v4533_v18  ;;  %v4573_v45 = vld [vmem:[#allocation3 + $0x164] ss:$16 sps:$4 sm:$0xff]   ;;  %v4575_v46 = vld [vmem:[#allocation3 + $0x16c] ss:$16 sps:$4 sm:$0xff]   ;;  %v4577_v49 = vld [vmem:[#allocation3 + $0x160] ss:$16 sps:$4 sm:$0xff]  }
  0x49   :  { %v60_v47 = vld [vmem:[%s5517_s0] sm:$0xff]  ;;  %v4578_v50 = vld [vmem:[#allocation3 + $0x168] ss:$16 sps:$4 sm:$0xff]   ;;  %vm3165_vm0 = vcmask 531456   ;;  %vm3169_vm1 = vcmask 1040384   ;;  %vm3908_vm2 = vcmask 7168  }
  0x4a   :  { %v68_v48 = vld [vmem:[%s5517_s0 + $0x40] sm:$0xff]  ;;  %v4584_v55 = vld [vmem:[#allocation3 + $0x188] ss:$16 sps:$4 sm:$0xff]  }
  0x4b   :  { %3193 = vmatpush1.bf16.msra.mxu0 %v4535_v19  ;;  %3537 = vmatpush1.bf16.msra.mxu1 %v4536_v20  ;;  %v3918_v51 = vcombine.high %v60_v47, %v68_v48  ;;  %v4579_v52 = vld [vmem:[#allocation3 + $0x184] ss:$16 sps:$4 sm:$0xff]   ;;  %v4581_v53 = vld [vmem:[#allocation3 + $0x18c] ss:$16 sps:$4 sm:$0xff]   ;;  %v4583_v54 = vld [vmem:[#allocation3 + $0x180] ss:$16 sps:$4 sm:$0xff]   ;;  %v3917_v6 = vcombine.low %v60_v47, %v68_v48 }
  0x4c   :  { %3194 = vmatprep.subr.bf16.mxu0 %v4537_v21  ;;  %3538 = vmatprep.subr.bf16.mxu1 %v4539_v22  ;;  %v4585_v56 = vld [vmem:[#allocation3 + $0x1a4] ss:$16 sps:$4 sm:$0xff]   ;;  %v4587_v57 = vld [vmem:[#allocation3 + $0x1ac] ss:$16 sps:$4 sm:$0xff]   ;;  %v4589_v58 = vld [vmem:[#allocation3 + $0x1a0] ss:$16 sps:$4 sm:$0xff]  }
  0x4d   :  { %3216 = vmatprep.mubr.bf16.mxu0 %v3918_v51  ;;  %3560 = vmatprep.mubr.bf16.mxu1 %v3918_v51  ;;  %v4590_v59 = vld [vmem:[#allocation3 + $0x1a8] ss:$16 sps:$4 sm:$0xff]   ;;  %v4591_v60 = vld [vmem:[#allocation3 + $0x1c4] ss:$16 sps:$4 sm:$0xff]   ;;  %v4593_v61 = vld [vmem:[#allocation3 + $0x1cc] ss:$16 sps:$4 sm:$0xff]  }
  0x4e   :  { %v4595_v62 = vld [vmem:[#allocation3 + $0x1c0] ss:$16 sps:$4 sm:$0xff]   ;;  %v4596_v63 = vld [vmem:[#allocation3 + $0x1c8] ss:$16 sps:$4 sm:$0xff]   ;;  %v4597_v0 = vld [vmem:[#allocation3 + $0x1e4] ss:$16 sps:$4 sm:$0xff]  }
  0x4f   :  { %3195 = vmatpush1.bf16.msra.mxu0 %v4541_v23  ;;  %3539 = vmatpush1.bf16.msra.mxu1 %v4542_v24  ;;  %v4599_v1 = vld [vmem:[#allocation3 + $0x1ec] ss:$16 sps:$4 sm:$0xff]   ;;  %v4601_v2 = vld [vmem:[#allocation3 + $0x1e0] ss:$16 sps:$4 sm:$0xff]   ;;  %v4602_v3 = vld [vmem:[#allocation3 + $0x1e8] ss:$16 sps:$4 sm:$0xff]  }
  0x50   :  { %3196 = vmatprep.subr.bf16.mxu0 %v4543_v25  ;;  %3540 = vmatprep.subr.bf16.mxu1 %v4545_v26  ;;  %v4605_v4 = vld [vmem:[#allocation3 + $0x204] ss:$16 sps:$4 sm:$0xff]   ;;  %v4608_v5 = vld [vmem:[#allocation3 + $0x20c] ss:$16 sps:$4 sm:$0xff]   ;;  %v4603_v7 = vld [vmem:[#allocation3 + $0x200] ss:$16 sps:$4 sm:$0xff]  }
  0x51   :  { %v4606_v8 = vld [vmem:[#allocation3 + $0x208] ss:$16 sps:$4 sm:$0xff]   ;;  %v4611_v9 = vld [vmem:[#allocation3 + $0x224] ss:$16 sps:$4 sm:$0xff]   ;;  %v4614_v10 = vld [vmem:[#allocation3 + $0x22c] ss:$16 sps:$4 sm:$0xff]  }
  0x52   :  { %v4609_v11 = vld [vmem:[#allocation3 + $0x220] ss:$16 sps:$4 sm:$0xff]   ;;  %v4612_v12 = vld [vmem:[#allocation3 + $0x228] ss:$16 sps:$4 sm:$0xff]   ;;  %v4617_v13 = vld [vmem:[#allocation3 + $0x244] ss:$16 sps:$4 sm:$0xff]  }
  0x53   :  { %3197 = vmatpush1.bf16.msra.mxu0 %v4547_v27  ;;  %3541 = vmatpush1.bf16.msra.mxu1 %v4548_v28  ;;  %v4620_v14 = vld [vmem:[#allocation3 + $0x24c] ss:$16 sps:$4 sm:$0xff]   ;;  %v4615_v15 = vld [vmem:[#allocation3 + $0x240] ss:$16 sps:$4 sm:$0xff]   ;;  %v4618_v16 = vld [vmem:[#allocation3 + $0x248] ss:$16 sps:$4 sm:$0xff]  }
  0x54   :  { %3198 = vmatprep.subr.bf16.mxu0 %v4549_v29  ;;  %3542 = vmatprep.subr.bf16.mxu1 %v4551_v30  ;;  %v4623_v17 = vld [vmem:[#allocation3 + $0x264] ss:$16 sps:$4 sm:$0xff]   ;;  %v4626_v18 = vld [vmem:[#allocation3 + $0x26c] ss:$16 sps:$4 sm:$0xff]   ;;  %v4621_v19 = vld [vmem:[#allocation3 + $0x260] ss:$16 sps:$4 sm:$0xff]  }
  0x55   :  { %v4624_v20 = vld [vmem:[#allocation3 + $0x268] ss:$16 sps:$4 sm:$0xff]   ;;  %v4629_v21 = vld [vmem:[#allocation3 + $0x284] ss:$16 sps:$4 sm:$0xff]   ;;  %v4632_v22 = vld [vmem:[#allocation3 + $0x28c] ss:$16 sps:$4 sm:$0xff]  }
  0x56   :  { %v4627_v23 = vld [vmem:[#allocation3 + $0x280] ss:$16 sps:$4 sm:$0xff]   ;;  %v4630_v24 = vld [vmem:[#allocation3 + $0x288] ss:$16 sps:$4 sm:$0xff]   ;;  %v4635_v25 = vld [vmem:[#allocation3 + $0x2a4] ss:$16 sps:$4 sm:$0xff]  }
  0x57   :  { %3199 = vmatpush1.bf16.msra.mxu0 %v4553_v31  ;;  %3543 = vmatpush1.bf16.msra.mxu1 %v4554_v32  ;;  %v4638_v26 = vld [vmem:[#allocation3 + $0x2ac] ss:$16 sps:$4 sm:$0xff]   ;;  %v4633_v27 = vld [vmem:[#allocation3 + $0x2a0] ss:$16 sps:$4 sm:$0xff]   ;;  %v4636_v28 = vld [vmem:[#allocation3 + $0x2a8] ss:$16 sps:$4 sm:$0xff]  }
  0x58   :  { %3200 = vmatprep.subr.bf16.mxu0 %v4555_v33  ;;  %3544 = vmatprep.subr.bf16.mxu1 %v4557_v34  ;;  %v4641_v29 = vld [vmem:[#allocation3 + $0x2c4] ss:$16 sps:$4 sm:$0xff]   ;;  %v4644_v30 = vld [vmem:[#allocation3 + $0x2cc] ss:$16 sps:$4 sm:$0xff]   ;;  %v4639_v33 = vld [vmem:[#allocation3 + $0x2c0] ss:$16 sps:$4 sm:$0xff]  }
  0x59   :  { %v5416_v31 = vld [vmem:[%s5517_s0 + $0x8] sm:$0xff] }
  0x5a   :  { %v5421_v32 = vld [vmem:[%s5517_s0 + $0x48] sm:$0xff] }
  0x5b   :  { %3201 = vmatpush1.bf16.msra.mxu0 %v4559_v35  ;;  %3545 = vmatpush1.bf16.msra.mxu1 %v4560_v36  ;;  %v4642_v34 = vld [vmem:[#allocation3 + $0x2c8] ss:$16 sps:$4 sm:$0xff]   ;;  %v3920_v35 = vcombine.high %v5416_v31, %v5421_v32  ;;  %v4647_v36 = vld [vmem:[#allocation3 + $0x2e4] ss:$16 sps:$4 sm:$0xff]  }
  0x5c   :  { %3202 = vmatprep.subr.bf16.mxu0 %v4561_v37  ;;  %3546 = vmatprep.subr.bf16.mxu1 %v4563_v38  ;;  %v4650_v37 = vld [vmem:[#allocation3 + $0x2ec] ss:$16 sps:$4 sm:$0xff]   ;;  %v4645_v38 = vld [vmem:[#allocation3 + $0x2e0] ss:$16 sps:$4 sm:$0xff]   ;;  %v4660_v47 = vld [vmem:[#allocation3 + $0x328] ss:$16 sps:$4 sm:$0xff]  }
  0x5d   :  { %v4665_v48 = vld [vmem:[#allocation3 + $0x344] ss:$16 sps:$4 sm:$0xff]   ;;  %v4666_v51 = vld [vmem:[#allocation3 + $0x348] ss:$16 sps:$4 sm:$0xff]  }
  0x5f   :  { %3203 = vmatpush1.bf16.msra.mxu0 %v4565_v39  ;;  %3547 = vmatpush1.bf16.msra.mxu1 %v4566_v40  ;;  %v4648_v39 = vld [vmem:[#allocation3 + $0x2e8] ss:$16 sps:$4 sm:$0xff]   ;;  %v4653_v40 = vld [vmem:[#allocation3 + $0x304] ss:$16 sps:$4 sm:$0xff]  }
  0x60   :  { %3204 = vmatprep.subr.bf16.mxu0 %v4567_v41  ;;  %3548 = vmatprep.subr.bf16.mxu1 %v4569_v42  ;;  %v4656_v41 = vld [vmem:[#allocation3 + $0x30c] ss:$16 sps:$4 sm:$0xff]   ;;  %v4651_v42 = vld [vmem:[#allocation3 + $0x300] ss:$16 sps:$4 sm:$0xff]  }
  0x63   :  { %3205 = vmatpush1.bf16.msra.mxu0 %v4571_v43  ;;  %3549 = vmatpush1.bf16.msra.mxu1 %v4572_v44  ;;  %v4654_v43 = vld [vmem:[#allocation3 + $0x308] ss:$16 sps:$4 sm:$0xff]   ;;  %v4659_v44 = vld [vmem:[#allocation3 + $0x324] ss:$16 sps:$4 sm:$0xff]  }
  0x64   :  { %3206 = vmatprep.subr.bf16.mxu0 %v4573_v45  ;;  %3550 = vmatprep.subr.bf16.mxu1 %v4575_v46  ;;  %v4662_v45 = vld [vmem:[#allocation3 + $0x32c] ss:$16 sps:$4 sm:$0xff]   ;;  %v4657_v46 = vld [vmem:[#allocation3 + $0x320] ss:$16 sps:$4 sm:$0xff]  }
  0x67   :  { %3207 = vmatpush1.bf16.msra.mxu0 %v4577_v49  ;;  %3551 = vmatpush1.bf16.msra.mxu1 %v4578_v50  ;;  %v4668_v49 = vld [vmem:[#allocation3 + $0x34c] ss:$16 sps:$4 sm:$0xff]   ;;  %v4663_v50 = vld [vmem:[#allocation3 + $0x340] ss:$16 sps:$4 sm:$0xff]  }
  0x68   :  { %3208 = vmatprep.subr.bf16.mxu0 %v4579_v52  ;;  %3552 = vmatprep.subr.bf16.mxu1 %v4581_v53  ;;  %v4671_v52 = vld [vmem:[#allocation3 + $0x364] ss:$16 sps:$4 sm:$0xff]   ;;  %v4674_v53 = vld [vmem:[#allocation3 + $0x36c] ss:$16 sps:$4 sm:$0xff]  }
  0x6b   :  { %3209 = vmatpush1.bf16.msra.mxu0 %v4583_v54  ;;  %3553 = vmatpush1.bf16.msra.mxu1 %v4584_v55  ;;  %v4669_v54 = vld [vmem:[#allocation3 + $0x360] ss:$16 sps:$4 sm:$0xff]   ;;  %v4672_v55 = vld [vmem:[#allocation3 + $0x368] ss:$16 sps:$4 sm:$0xff]  }
  0x6c   :  { %3210 = vmatprep.subr.bf16.mxu0 %v4585_v56  ;;  %3554 = vmatprep.subr.bf16.mxu1 %v4587_v57  ;;  %v4677_v56 = vld [vmem:[#allocation3 + $0x384] ss:$16 sps:$4 sm:$0xff]   ;;  %v4680_v57 = vld [vmem:[#allocation3 + $0x38c] ss:$16 sps:$4 sm:$0xff]  }
  0x6f   :  { %3211 = vmatpush1.bf16.msra.mxu0 %v4589_v58  ;;  %3555 = vmatpush1.bf16.msra.mxu1 %v4590_v59  ;;  %v4675_v58 = vld [vmem:[#allocation3 + $0x380] ss:$16 sps:$4 sm:$0xff]   ;;  %v4678_v59 = vld [vmem:[#allocation3 + $0x388] ss:$16 sps:$4 sm:$0xff]  }
  0x70   :  { %3212 = vmatprep.subr.bf16.mxu0 %v4591_v60  ;;  %3556 = vmatprep.subr.bf16.mxu1 %v4593_v61  ;;  %v4683_v60 = vld [vmem:[#allocation3 + $0x3a4] ss:$16 sps:$4 sm:$0xff]   ;;  %v4686_v61 = vld [vmem:[#allocation3 + $0x3ac] ss:$16 sps:$4 sm:$0xff]  }
  0x73   :  { %3213 = vmatpush1.bf16.msra.mxu0 %v4595_v62  ;;  %3557 = vmatpush1.bf16.msra.mxu1 %v4596_v63  ;;  %v4681_v62 = vld [vmem:[#allocation3 + $0x3a0] ss:$16 sps:$4 sm:$0xff]   ;;  %v4684_v63 = vld [vmem:[#allocation3 + $0x3a8] ss:$16 sps:$4 sm:$0xff]  }
  0x74   :  { %3214 = vmatprep.subr.bf16.mxu0 %v4597_v0  ;;  %3558 = vmatprep.subr.bf16.mxu1 %v4599_v1  ;;  %v4689_v0 = vld [vmem:[#allocation3 + $0x3c4] ss:$16 sps:$4 sm:$0xff]   ;;  %v4692_v1 = vld [vmem:[#allocation3 + $0x3cc] ss:$16 sps:$4 sm:$0xff]  }
  0x77   :  { %3215 = vmatpush1.bf16.msra.mxu0 %v4601_v2  ;;  %3559 = vmatpush1.bf16.msra.mxu1 %v4602_v3  ;;  %v4687_v2 = vld [vmem:[#allocation3 + $0x3c0] ss:$16 sps:$4 sm:$0xff]   ;;  %v4690_v3 = vld [vmem:[#allocation3 + $0x3c8] ss:$16 sps:$4 sm:$0xff]  }
  0x78   :  { %3227 = vmatprep.subr.bf16.mxu0 %v4605_v4  ;;  %3571 = vmatprep.subr.bf16.mxu1 %v4608_v5  ;;  %v4695_v4 = vld [vmem:[#allocation3 + $0x3e4] ss:$16 sps:$4 sm:$0xff]   ;;  %v4698_v5 = vld [vmem:[#allocation3 + $0x3ec] ss:$16 sps:$4 sm:$0xff]  }
  0x7a   :  { %3217 = vmatmul.mubr.bf16.vlgmr.msra.gmra.mrb[0].mxu0 %v3917_v6  ;;  %3561 = vmatmul.mubr.bf16.vlgmr.msra.gmra.mrb[0].mxu1 %v3917_v6  ;;  %v4693_v6 = vld [vmem:[#allocation3 + $0x3e0] ss:$16 sps:$4 sm:$0xff]  }
  0x7b   :  { %3228 = vmatpush1.bf16.msra.mxu0 %v4603_v7  ;;  %3572 = vmatpush1.bf16.msra.mxu1 %v4606_v8  ;;  %v4696_v7 = vld [vmem:[#allocation3 + $0x3e8] ss:$16 sps:$4 sm:$0xff]   ;;  %v4701_v8 = vld [vmem:[#allocation3 + $0x404] ss:$16 sps:$4 sm:$0xff]  }
  0x7c   :  { %3229 = vmatprep.subr.bf16.mxu0 %v4611_v9  ;;  %3573 = vmatprep.subr.bf16.mxu1 %v4614_v10  ;;  %v4704_v9 = vld [vmem:[#allocation3 + $0x40c] ss:$16 sps:$4 sm:$0xff]   ;;  %v3919_v10 = vcombine.low %v5416_v31, %v5421_v32  ;;  %v4726_v31 = vld [vmem:[#allocation3 + $0x488] ss:$16 sps:$4 sm:$0xff]   ;;  %v4731_v32 = vld [vmem:[#allocation3 + $0x4a4] ss:$16 sps:$4 sm:$0xff]  }
  0x7d   :  { %3259 = vmatprep.mubr.bf16.mxu0 %v3920_v35  ;;  %3603 = vmatprep.mubr.bf16.mxu1 %v3920_v35  ;;  %v4732_v35 = vld [vmem:[#allocation3 + $0x4a8] ss:$16 sps:$4 sm:$0xff]  }
  0x7f   :  { %3230 = vmatpush1.bf16.msra.mxu0 %v4609_v11  ;;  %3574 = vmatpush1.bf16.msra.mxu1 %v4612_v12  ;;  %v4699_v11 = vld [vmem:[#allocation3 + $0x400] ss:$16 sps:$4 sm:$0xff]   ;;  %v4702_v12 = vld [vmem:[#allocation3 + $0x408] ss:$16 sps:$4 sm:$0xff]  }
  0x80   :  { %3231 = vmatprep.subr.bf16.mxu0 %v4617_v13  ;;  %3575 = vmatprep.subr.bf16.mxu1 %v4620_v14  ;;  %v4707_v13 = vld [vmem:[#allocation3 + $0x424] ss:$16 sps:$4 sm:$0xff]   ;;  %v4710_v14 = vld [vmem:[#allocation3 + $0x42c] ss:$16 sps:$4 sm:$0xff]  }
  0x83   :  { %3232 = vmatpush1.bf16.msra.mxu0 %v4615_v15  ;;  %3576 = vmatpush1.bf16.msra.mxu1 %v4618_v16  ;;  %v5430_v15 = vld [vmem:[%s5517_s0 + $0x10] sm:$0xff] }
  0x84   :  { %3233 = vmatprep.subr.bf16.mxu0 %v4623_v17  ;;  %3577 = vmatprep.subr.bf16.mxu1 %v4626_v18  ;;  %v5435_v16 = vld [vmem:[%s5517_s0 + $0x50] sm:$0xff] }
  0x85   :  { %v3922_v17 = vcombine.high %v5430_v15, %v5435_v16  ;;  %v4705_v18 = vld [vmem:[#allocation3 + $0x420] ss:$16 sps:$4 sm:$0xff]  }
  0x87   :  { %3234 = vmatpush1.bf16.msra.mxu0 %v4621_v19  ;;  %3578 = vmatpush1.bf16.msra.mxu1 %v4624_v20  ;;  %v4708_v19 = vld [vmem:[#allocation3 + $0x428] ss:$16 sps:$4 sm:$0xff]   ;;  %v4713_v20 = vld [vmem:[#allocation3 + $0x444] ss:$16 sps:$4 sm:$0xff]  }
  0x88   :  { %3235 = vmatprep.subr.bf16.mxu0 %v4629_v21  ;;  %3579 = vmatprep.subr.bf16.mxu1 %v4632_v22  ;;  %v4716_v21 = vld [vmem:[#allocation3 + $0x44c] ss:$16 sps:$4 sm:$0xff]   ;;  %v4711_v22 = vld [vmem:[#allocation3 + $0x440] ss:$16 sps:$4 sm:$0xff]  }
  0x8b   :  { %3236 = vmatpush1.bf16.msra.mxu0 %v4627_v23  ;;  %3580 = vmatpush1.bf16.msra.mxu1 %v4630_v24  ;;  %v4714_v23 = vld [vmem:[#allocation3 + $0x448] ss:$16 sps:$4 sm:$0xff]   ;;  %v4719_v24 = vld [vmem:[#allocation3 + $0x464] ss:$16 sps:$4 sm:$0xff]  }
  0x8c   :  { %3237 = vmatprep.subr.bf16.mxu0 %v4635_v25  ;;  %3581 = vmatprep.subr.bf16.mxu1 %v4638_v26  ;;  %v4722_v25 = vld [vmem:[#allocation3 + $0x46c] ss:$16 sps:$4 sm:$0xff]   ;;  %v4717_v26 = vld [vmem:[#allocation3 + $0x460] ss:$16 sps:$4 sm:$0xff]  }
  0x8f   :  { %3238 = vmatpush1.bf16.msra.mxu0 %v4633_v27  ;;  %3582 = vmatpush1.bf16.msra.mxu1 %v4636_v28  ;;  %v4720_v27 = vld [vmem:[#allocation3 + $0x468] ss:$16 sps:$4 sm:$0xff]   ;;  %v4725_v28 = vld [vmem:[#allocation3 + $0x484] ss:$16 sps:$4 sm:$0xff]  }
  0x90   :  { %3239 = vmatprep.subr.bf16.mxu0 %v4641_v29  ;;  %3583 = vmatprep.subr.bf16.mxu1 %v4644_v30  ;;  %v4728_v29 = vld [vmem:[#allocation3 + $0x48c] ss:$16 sps:$4 sm:$0xff]   ;;  %v4723_v30 = vld [vmem:[#allocation3 + $0x480] ss:$16 sps:$4 sm:$0xff]  }
  0x93   :  { %3240 = vmatpush1.bf16.msra.mxu0 %v4639_v33  ;;  %3584 = vmatpush1.bf16.msra.mxu1 %v4642_v34  ;;  %v4734_v33 = vld [vmem:[#allocation3 + $0x4ac] ss:$16 sps:$4 sm:$0xff]   ;;  %v4729_v34 = vld [vmem:[#allocation3 + $0x4a0] ss:$16 sps:$4 sm:$0xff]  }
  0x94   :  { %3241 = vmatprep.subr.bf16.mxu0 %v4647_v36  ;;  %3585 = vmatprep.subr.bf16.mxu1 %v4650_v37  ;;  %v4737_v36 = vld [vmem:[#allocation3 + $0x4c4] ss:$16 sps:$4 sm:$0xff]   ;;  %v4740_v37 = vld [vmem:[#allocation3 + $0x4cc] ss:$16 sps:$4 sm:$0xff]  }
  0x97   :  { %3242 = vmatpush1.bf16.msra.mxu0 %v4645_v38  ;;  %3586 = vmatpush1.bf16.msra.mxu1 %v4648_v39  ;;  %v4735_v38 = vld [vmem:[#allocation3 + $0x4c0] ss:$16 sps:$4 sm:$0xff]   ;;  %v4738_v39 = vld [vmem:[#allocation3 + $0x4c8] ss:$16 sps:$4 sm:$0xff]  }
  0x98   :  { %3243 = vmatprep.subr.bf16.mxu0 %v4653_v40  ;;  %3587 = vmatprep.subr.bf16.mxu1 %v4656_v41  ;;  %v4743_v40 = vld [vmem:[#allocation3 + $0x4e4] ss:$16 sps:$4 sm:$0xff]   ;;  %v4746_v41 = vld [vmem:[#allocation3 + $0x4ec] ss:$16 sps:$4 sm:$0xff]  }
  0x9b   :  { %3244 = vmatpush1.bf16.msra.mxu0 %v4651_v42  ;;  %3588 = vmatpush1.bf16.msra.mxu1 %v4654_v43  ;;  %v4741_v42 = vld [vmem:[#allocation3 + $0x4e0] ss:$16 sps:$4 sm:$0xff]   ;;  %v4744_v43 = vld [vmem:[#allocation3 + $0x4e8] ss:$16 sps:$4 sm:$0xff]  }
  0x9c   :  { %3245 = vmatprep.subr.bf16.mxu0 %v4659_v44  ;;  %3589 = vmatprep.subr.bf16.mxu1 %v4662_v45  ;;  %v4749_v44 = vld [vmem:[#allocation3 + $0x504] ss:$16 sps:$4 sm:$0xff]   ;;  %v4752_v45 = vld [vmem:[#allocation3 + $0x50c] ss:$16 sps:$4 sm:$0xff]  }
  0x9f   :  { %3246 = vmatpush1.bf16.msra.mxu0 %v4657_v46  ;;  %3590 = vmatpush1.bf16.msra.mxu1 %v4660_v47  ;;  %v4747_v46 = vld [vmem:[#allocation3 + $0x500] ss:$16 sps:$4 sm:$0xff]   ;;  %v4750_v47 = vld [vmem:[#allocation3 + $0x508] ss:$16 sps:$4 sm:$0xff]  }
  0xa0   :  { %3247 = vmatprep.subr.bf16.mxu0 %v4665_v48  ;;  %3591 = vmatprep.subr.bf16.mxu1 %v4668_v49  ;;  %v4755_v48 = vld [vmem:[#allocation3 + $0x524] ss:$16 sps:$4 sm:$0xff]   ;;  %v4758_v49 = vld [vmem:[#allocation3 + $0x52c] ss:$16 sps:$4 sm:$0xff]  }
  0xa3   :  { %3248 = vmatpush1.bf16.msra.mxu0 %v4663_v50  ;;  %3592 = vmatpush1.bf16.msra.mxu1 %v4666_v51  ;;  %v4753_v50 = vld [vmem:[#allocation3 + $0x520] ss:$16 sps:$4 sm:$0xff]   ;;  %v4756_v51 = vld [vmem:[#allocation3 + $0x528] ss:$16 sps:$4 sm:$0xff]  }
  0xa4   :  { %3249 = vmatprep.subr.bf16.mxu0 %v4671_v52  ;;  %3593 = vmatprep.subr.bf16.mxu1 %v4674_v53  ;;  %v4761_v52 = vld [vmem:[#allocation3 + $0x544] ss:$16 sps:$4 sm:$0xff]   ;;  %v4764_v53 = vld [vmem:[#allocation3 + $0x54c] ss:$16 sps:$4 sm:$0xff]  }
  0xa7   :  { %3250 = vmatpush1.bf16.msra.mxu0 %v4669_v54  ;;  %3594 = vmatpush1.bf16.msra.mxu1 %v4672_v55  ;;  %v4759_v54 = vld [vmem:[#allocation3 + $0x540] ss:$16 sps:$4 sm:$0xff]   ;;  %v4762_v55 = vld [vmem:[#allocation3 + $0x548] ss:$16 sps:$4 sm:$0xff]  }
  0xa8   :  { %3251 = vmatprep.subr.bf16.mxu0 %v4677_v56  ;;  %3595 = vmatprep.subr.bf16.mxu1 %v4680_v57  ;;  %v4767_v56 = vld [vmem:[#allocation3 + $0x564] ss:$16 sps:$4 sm:$0xff]   ;;  %v4770_v57 = vld [vmem:[#allocation3 + $0x56c] ss:$16 sps:$4 sm:$0xff]  }
  0xab   :  { %3252 = vmatpush1.bf16.msra.mxu0 %v4675_v58  ;;  %3596 = vmatpush1.bf16.msra.mxu1 %v4678_v59  ;;  %v4765_v58 = vld [vmem:[#allocation3 + $0x560] ss:$16 sps:$4 sm:$0xff]   ;;  %v4768_v59 = vld [vmem:[#allocation3 + $0x568] ss:$16 sps:$4 sm:$0xff]  }
  0xac   :  { %3253 = vmatprep.subr.bf16.mxu0 %v4683_v60  ;;  %3597 = vmatprep.subr.bf16.mxu1 %v4686_v61  ;;  %v4773_v60 = vld [vmem:[#allocation3 + $0x584] ss:$16 sps:$4 sm:$0xff]   ;;  %v4776_v61 = vld [vmem:[#allocation3 + $0x58c] ss:$16 sps:$4 sm:$0xff]  }
  0xaf   :  { %3254 = vmatpush1.bf16.msra.mxu0 %v4681_v62  ;;  %3598 = vmatpush1.bf16.msra.mxu1 %v4684_v63  ;;  %v4771_v62 = vld [vmem:[#allocation3 + $0x580] ss:$16 sps:$4 sm:$0xff]   ;;  %v4774_v63 = vld [vmem:[#allocation3 + $0x588] ss:$16 sps:$4 sm:$0xff]  }
  0xb0   :  { %3255 = vmatprep.subr.bf16.mxu0 %v4689_v0  ;;  %3599 = vmatprep.subr.bf16.mxu1 %v4692_v1  ;;  %v4779_v0 = vld [vmem:[#allocation3 + $0x5a4] ss:$16 sps:$4 sm:$0xff]   ;;  %v4782_v1 = vld [vmem:[#allocation3 + $0x5ac] ss:$16 sps:$4 sm:$0xff]  }
  0xb3   :  { %3256 = vmatpush1.bf16.msra.mxu0 %v4687_v2  ;;  %3600 = vmatpush1.bf16.msra.mxu1 %v4690_v3  ;;  %v4777_v2 = vld [vmem:[#allocation3 + $0x5a0] ss:$16 sps:$4 sm:$0xff]   ;;  %v4780_v3 = vld [vmem:[#allocation3 + $0x5a8] ss:$16 sps:$4 sm:$0xff]  }
  0xb4   :  { %3257 = vmatprep.subr.bf16.mxu0 %v4695_v4  ;;  %3601 = vmatprep.subr.bf16.mxu1 %v4698_v5  ;;  %v4785_v4 = vld [vmem:[#allocation3 + $0x5c4] ss:$16 sps:$4 sm:$0xff]   ;;  %v4788_v5 = vld [vmem:[#allocation3 + $0x5cc] ss:$16 sps:$4 sm:$0xff]  }
  0xb7   :  { %3258 = vmatpush1.bf16.msra.mxu0 %v4693_v6  ;;  %3602 = vmatpush1.bf16.msra.mxu1 %v4696_v7  ;;  %v4783_v6 = vld [vmem:[#allocation3 + $0x5c0] ss:$16 sps:$4 sm:$0xff]   ;;  %v4786_v7 = vld [vmem:[#allocation3 + $0x5c8] ss:$16 sps:$4 sm:$0xff]  }
  0xb8   :  { %3270 = vmatprep.subr.bf16.mxu0 %v4701_v8  ;;  %3614 = vmatprep.subr.bf16.mxu1 %v4704_v9  ;;  %v4791_v8 = vld [vmem:[#allocation3 + $0x5e4] ss:$16 sps:$4 sm:$0xff]   ;;  %v4794_v9 = vld [vmem:[#allocation3 + $0x5ec] ss:$16 sps:$4 sm:$0xff]  }
  0xba   :  { %3260 = vmatmul.mubr.bf16.vlgmr.msra.gmra.mrb[0].mxu0 %v3919_v10  ;;  %3604 = vmatmul.mubr.bf16.vlgmr.msra.gmra.mrb[0].mxu1 %v3919_v10  ;;  %v4789_v10 = vld [vmem:[#allocation3 + $0x5e0] ss:$16 sps:$4 sm:$0xff]  }
  0xbb   :  { %3271 = vmatpush1.bf16.msra.mxu0 %v4699_v11  ;;  %3615 = vmatpush1.bf16.msra.mxu1 %v4702_v12  ;;  %v4792_v11 = vld [vmem:[#allocation3 + $0x5e8] ss:$16 sps:$4 sm:$0xff]   ;;  %v4797_v12 = vld [vmem:[#allocation3 + $0x604] ss:$16 sps:$4 sm:$0xff]  }
  0xbc   :  { %3272 = vmatprep.subr.bf16.mxu0 %v4707_v13  ;;  %3616 = vmatprep.subr.bf16.mxu1 %v4710_v14  ;;  %v4800_v13 = vld [vmem:[#allocation3 + $0x60c] ss:$16 sps:$4 sm:$0xff]   ;;  %v4795_v14 = vld [vmem:[#allocation3 + $0x600] ss:$16 sps:$4 sm:$0xff]  }
  0xbd   :  { %3302 = vmatprep.mubr.bf16.mxu0 %v3922_v17  ;;  %3646 = vmatprep.mubr.bf16.mxu1 %v3922_v17  ;;  %v4798_v17 = vld [vmem:[#allocation3 + $0x608] ss:$16 sps:$4 sm:$0xff]  }
  0xbf   :  { %3273 = vmatpush1.bf16.msra.mxu0 %v4705_v18  ;;  %3617 = vmatpush1.bf16.msra.mxu1 %v4708_v19  ;;  %v3921_v18 = vcombine.low %v5430_v15, %v5435_v16  ;;  %v5444_v19 = vld [vmem:[%s5517_s0 + $0x18] sm:$0xff]  ;;  %v4801_v15 = vld [vmem:[#allocation3 + $0x620] ss:$16 sps:$4 sm:$0xff]  }
  0xc0   :  { %3274 = vmatprep.subr.bf16.mxu0 %v4713_v20  ;;  %3618 = vmatprep.subr.bf16.mxu1 %v4716_v21  ;;  %v5449_v20 = vld [vmem:[%s5517_s0 + $0x58] sm:$0xff] }
  0xc1   :  { %v4803_v21 = vld [vmem:[#allocation3 + $0x624] ss:$16 sps:$4 sm:$0xff]   ;;  %v4804_v16 = vld [vmem:[#allocation3 + $0x628] ss:$16 sps:$4 sm:$0xff]  }
  0xc3   :  { %3275 = vmatpush1.bf16.msra.mxu0 %v4711_v22  ;;  %3619 = vmatpush1.bf16.msra.mxu1 %v4714_v23  ;;  %v4806_v22 = vld [vmem:[#allocation3 + $0x62c] ss:$16 sps:$4 sm:$0xff]   ;;  %v3924_v23 = vcombine.high %v5444_v19, %v5449_v20 }
  0xc4   :  { %3276 = vmatprep.subr.bf16.mxu0 %v4719_v24  ;;  %3620 = vmatprep.subr.bf16.mxu1 %v4722_v25  ;;  %v4809_v24 = vld [vmem:[#allocation3 + $0x644] ss:$16 sps:$4 sm:$0xff]   ;;  %v4812_v25 = vld [vmem:[#allocation3 + $0x64c] ss:$16 sps:$4 sm:$0xff]  }
  0xc7   :  { %3277 = vmatpush1.bf16.msra.mxu0 %v4717_v26  ;;  %3621 = vmatpush1.bf16.msra.mxu1 %v4720_v27  ;;  %v4807_v26 = vld [vmem:[#allocation3 + $0x640] ss:$16 sps:$4 sm:$0xff]   ;;  %v4810_v27 = vld [vmem:[#allocation3 + $0x648] ss:$16 sps:$4 sm:$0xff]  }
  0xc8   :  { %3278 = vmatprep.subr.bf16.mxu0 %v4725_v28  ;;  %3622 = vmatprep.subr.bf16.mxu1 %v4728_v29  ;;  %v4815_v28 = vld [vmem:[#allocation3 + $0x664] ss:$16 sps:$4 sm:$0xff]   ;;  %v4818_v29 = vld [vmem:[#allocation3 + $0x66c] ss:$16 sps:$4 sm:$0xff]  }
  0xcb   :  { %3279 = vmatpush1.bf16.msra.mxu0 %v4723_v30  ;;  %3623 = vmatpush1.bf16.msra.mxu1 %v4726_v31  ;;  %v4813_v30 = vld [vmem:[#allocation3 + $0x660] ss:$16 sps:$4 sm:$0xff]   ;;  %v4816_v31 = vld [vmem:[#allocation3 + $0x668] ss:$16 sps:$4 sm:$0xff]  }
  0xcc   :  { %3280 = vmatprep.subr.bf16.mxu0 %v4731_v32  ;;  %3624 = vmatprep.subr.bf16.mxu1 %v4734_v33  ;;  %v4821_v32 = vld [vmem:[#allocation3 + $0x684] ss:$16 sps:$4 sm:$0xff]   ;;  %v4824_v33 = vld [vmem:[#allocation3 + $0x68c] ss:$16 sps:$4 sm:$0xff]  }
  0xcf   :  { %3281 = vmatpush1.bf16.msra.mxu0 %v4729_v34  ;;  %3625 = vmatpush1.bf16.msra.mxu1 %v4732_v35  ;;  %v4819_v34 = vld [vmem:[#allocation3 + $0x680] ss:$16 sps:$4 sm:$0xff]   ;;  %v4822_v35 = vld [vmem:[#allocation3 + $0x688] ss:$16 sps:$4 sm:$0xff]  }
  0xd0   :  { %3282 = vmatprep.subr.bf16.mxu0 %v4737_v36  ;;  %3626 = vmatprep.subr.bf16.mxu1 %v4740_v37  ;;  %v4827_v36 = vld [vmem:[#allocation3 + $0x6a4] ss:$16 sps:$4 sm:$0xff]   ;;  %v4830_v37 = vld [vmem:[#allocation3 + $0x6ac] ss:$16 sps:$4 sm:$0xff]  }
  0xd3   :  { %3283 = vmatpush1.bf16.msra.mxu0 %v4735_v38  ;;  %3627 = vmatpush1.bf16.msra.mxu1 %v4738_v39  ;;  %v4825_v38 = vld [vmem:[#allocation3 + $0x6a0] ss:$16 sps:$4 sm:$0xff]   ;;  %v4828_v39 = vld [vmem:[#allocation3 + $0x6a8] ss:$16 sps:$4 sm:$0xff]  }
  0xd4   :  { %3284 = vmatprep.subr.bf16.mxu0 %v4743_v40  ;;  %3628 = vmatprep.subr.bf16.mxu1 %v4746_v41  ;;  %v4833_v40 = vld [vmem:[#allocation3 + $0x6c4] ss:$16 sps:$4 sm:$0xff]   ;;  %v4836_v41 = vld [vmem:[#allocation3 + $0x6cc] ss:$16 sps:$4 sm:$0xff]  }
  0xd7   :  { %3285 = vmatpush1.bf16.msra.mxu0 %v4741_v42  ;;  %3629 = vmatpush1.bf16.msra.mxu1 %v4744_v43  ;;  %v4831_v42 = vld [vmem:[#allocation3 + $0x6c0] ss:$16 sps:$4 sm:$0xff]   ;;  %v4834_v43 = vld [vmem:[#allocation3 + $0x6c8] ss:$16 sps:$4 sm:$0xff]  }
  0xd8   :  { %3286 = vmatprep.subr.bf16.mxu0 %v4749_v44  ;;  %3630 = vmatprep.subr.bf16.mxu1 %v4752_v45  ;;  %v4839_v44 = vld [vmem:[#allocation3 + $0x6e4] ss:$16 sps:$4 sm:$0xff]   ;;  %v4842_v45 = vld [vmem:[#allocation3 + $0x6ec] ss:$16 sps:$4 sm:$0xff]  }
  0xdb   :  { %3287 = vmatpush1.bf16.msra.mxu0 %v4747_v46  ;;  %3631 = vmatpush1.bf16.msra.mxu1 %v4750_v47  ;;  %v4837_v46 = vld [vmem:[#allocation3 + $0x6e0] ss:$16 sps:$4 sm:$0xff]   ;;  %v4840_v47 = vld [vmem:[#allocation3 + $0x6e8] ss:$16 sps:$4 sm:$0xff]  }
  0xdc   :  { %3288 = vmatprep.subr.bf16.mxu0 %v4755_v48  ;;  %3632 = vmatprep.subr.bf16.mxu1 %v4758_v49  ;;  %v4845_v48 = vld [vmem:[#allocation3 + $0x704] ss:$16 sps:$4 sm:$0xff]   ;;  %v4848_v49 = vld [vmem:[#allocation3 + $0x70c] ss:$16 sps:$4 sm:$0xff]  }
  0xdf   :  { %3289 = vmatpush1.bf16.msra.mxu0 %v4753_v50  ;;  %3633 = vmatpush1.bf16.msra.mxu1 %v4756_v51  ;;  %v4843_v50 = vld [vmem:[#allocation3 + $0x700] ss:$16 sps:$4 sm:$0xff]   ;;  %v4846_v51 = vld [vmem:[#allocation3 + $0x708] ss:$16 sps:$4 sm:$0xff]  }
  0xe0   :  { %3290 = vmatprep.subr.bf16.mxu0 %v4761_v52  ;;  %3634 = vmatprep.subr.bf16.mxu1 %v4764_v53  ;;  %v4851_v52 = vld [vmem:[#allocation3 + $0x724] ss:$16 sps:$4 sm:$0xff]   ;;  %v4854_v53 = vld [vmem:[#allocation3 + $0x72c] ss:$16 sps:$4 sm:$0xff]  }
  0xe3   :  { %3291 = vmatpush1.bf16.msra.mxu0 %v4759_v54  ;;  %3635 = vmatpush1.bf16.msra.mxu1 %v4762_v55  ;;  %v4849_v54 = vld [vmem:[#allocation3 + $0x720] ss:$16 sps:$4 sm:$0xff]   ;;  %v4852_v55 = vld [vmem:[#allocation3 + $0x728] ss:$16 sps:$4 sm:$0xff]  }
  0xe4   :  { %3292 = vmatprep.subr.bf16.mxu0 %v4767_v56  ;;  %3636 = vmatprep.subr.bf16.mxu1 %v4770_v57  ;;  %v4857_v56 = vld [vmem:[#allocation3 + $0x744] ss:$16 sps:$4 sm:$0xff]   ;;  %v4860_v57 = vld [vmem:[#allocation3 + $0x74c] ss:$16 sps:$4 sm:$0xff]  }
  0xe7   :  { %3293 = vmatpush1.bf16.msra.mxu0 %v4765_v58  ;;  %3637 = vmatpush1.bf16.msra.mxu1 %v4768_v59  ;;  %v4855_v58 = vld [vmem:[#allocation3 + $0x740] ss:$16 sps:$4 sm:$0xff]   ;;  %v4858_v59 = vld [vmem:[#allocation3 + $0x748] ss:$16 sps:$4 sm:$0xff]  }
  0xe8   :  { %3294 = vmatprep.subr.bf16.mxu0 %v4773_v60  ;;  %3638 = vmatprep.subr.bf16.mxu1 %v4776_v61  ;;  %v4863_v60 = vld [vmem:[#allocation3 + $0x764] ss:$16 sps:$4 sm:$0xff]   ;;  %v4866_v61 = vld [vmem:[#allocation3 + $0x76c] ss:$16 sps:$4 sm:$0xff]  }
  0xeb   :  { %3295 = vmatpush1.bf16.msra.mxu0 %v4771_v62  ;;  %3639 = vmatpush1.bf16.msra.mxu1 %v4774_v63  ;;  %v4861_v62 = vld [vmem:[#allocation3 + $0x760] ss:$16 sps:$4 sm:$0xff]   ;;  %v4864_v63 = vld [vmem:[#allocation3 + $0x768] ss:$16 sps:$4 sm:$0xff]  }
  0xec   :  { %3296 = vmatprep.subr.bf16.mxu0 %v4779_v0  ;;  %3640 = vmatprep.subr.bf16.mxu1 %v4782_v1  ;;  %v4869_v0 = vld [vmem:[#allocation3 + $0x784] ss:$16 sps:$4 sm:$0xff]   ;;  %v4872_v1 = vld [vmem:[#allocation3 + $0x78c] ss:$16 sps:$4 sm:$0xff]  }
  0xef   :  { %3297 = vmatpush1.bf16.msra.mxu0 %v4777_v2  ;;  %3641 = vmatpush1.bf16.msra.mxu1 %v4780_v3  ;;  %v4867_v2 = vld [vmem:[#allocation3 + $0x780] ss:$16 sps:$4 sm:$0xff]   ;;  %v4870_v3 = vld [vmem:[#allocation3 + $0x788] ss:$16 sps:$4 sm:$0xff]  }
  0xf0   :  { %3298 = vmatprep.subr.bf16.mxu0 %v4785_v4  ;;  %3642 = vmatprep.subr.bf16.mxu1 %v4788_v5  ;;  %v4875_v4 = vld [vmem:[#allocation3 + $0x7a4] ss:$16 sps:$4 sm:$0xff]   ;;  %v4878_v5 = vld [vmem:[#allocation3 + $0x7ac] ss:$16 sps:$4 sm:$0xff]  }
  0xf3   :  { %3299 = vmatpush1.bf16.msra.mxu0 %v4783_v6  ;;  %3643 = vmatpush1.bf16.msra.mxu1 %v4786_v7  ;;  %v4873_v6 = vld [vmem:[#allocation3 + $0x7a0] ss:$16 sps:$4 sm:$0xff]   ;;  %v4876_v7 = vld [vmem:[#allocation3 + $0x7a8] ss:$16 sps:$4 sm:$0xff]  }
  0xf4   :  { %3300 = vmatprep.subr.bf16.mxu0 %v4791_v8  ;;  %3644 = vmatprep.subr.bf16.mxu1 %v4794_v9  ;;  %v4881_v8 = vld [vmem:[#allocation3 + $0x7c4] ss:$16 sps:$4 sm:$0xff]   ;;  %v4884_v9 = vld [vmem:[#allocation3 + $0x7cc] ss:$16 sps:$4 sm:$0xff]  }
  0xf7   :  { %3301 = vmatpush1.bf16.msra.mxu0 %v4789_v10  ;;  %3645 = vmatpush1.bf16.msra.mxu1 %v4792_v11  ;;  %v4879_v10 = vld [vmem:[#allocation3 + $0x7c0] ss:$16 sps:$4 sm:$0xff]   ;;  %v4882_v11 = vld [vmem:[#allocation3 + $0x7c8] ss:$16 sps:$4 sm:$0xff]  }
  0xf8   :  { %3313 = vmatprep.subr.bf16.mxu0 %v4797_v12  ;;  %3657 = vmatprep.subr.bf16.mxu1 %v4800_v13  ;;  %v4887_v12 = vld [vmem:[#allocation3 + $0x7e4] ss:$16 sps:$4 sm:$0xff]   ;;  %v4890_v13 = vld [vmem:[#allocation3 + $0x7ec] ss:$16 sps:$4 sm:$0xff]  }
  0xfa   :  { %3303 = vmatmul.mubr.bf16.vlgmr.msra.gmra.mrb[0].mxu0 %v3921_v18  ;;  %3647 = vmatmul.mubr.bf16.vlgmr.msra.gmra.mrb[0].mxu1 %v3921_v18  ;;  %v4893_v18 = vld [vmem:[#allocation3 + $0x804] ss:$16 sps:$4 sm:$0xff]  }
  0xfb   :  { %3314 = vmatpush1.bf16.msra.mxu0 %v4795_v14  ;;  %3658 = vmatpush1.bf16.msra.mxu1 %v4798_v17  ;;  %v4885_v14 = vld [vmem:[#allocation3 + $0x7e0] ss:$16 sps:$4 sm:$0xff]   ;;  %v4888_v17 = vld [vmem:[#allocation3 + $0x7e8] ss:$16 sps:$4 sm:$0xff]  }
  0xfc   :  { %3315 = vmatprep.subr.bf16.mxu0 %v4803_v21  ;;  %3659 = vmatprep.subr.bf16.mxu1 %v4806_v22  ;;  %v4896_v21 = vld [vmem:[#allocation3 + $0x80c] ss:$16 sps:$4 sm:$0xff]  }
  0xfd   :  { %3345 = vmatprep.mubr.bf16.mxu0 %v3924_v23  ;;  %3689 = vmatprep.mubr.bf16.mxu1 %v3924_v23  ;;  %v5456_v22 = vld [vmem:[%s5517_s0 + $0x20] sm:$0xff]  ;;  %v3923_v23 = vcombine.low %v5444_v19, %v5449_v20  ;;  %v4900_v19 = vld [vmem:[#allocation3 + $0x828] ss:$16 sps:$4 sm:$0xff]  }
  0xfe   :  { %v4905_v20 = vld [vmem:[#allocation3 + $0x844] ss:$16 sps:$4 sm:$0xff]  }
  0xff   :  { %3316 = vmatpush1.bf16.msra.mxu0 %v4801_v15  ;;  %3660 = vmatpush1.bf16.msra.mxu1 %v4804_v16  ;;  %v5463_v15 = vld [vmem:[%s5517_s0 + $0x60] sm:$0xff] }
 0x100   :  { %3317 = vmatprep.subr.bf16.mxu0 %v4809_v24  ;;  %3661 = vmatprep.subr.bf16.mxu1 %v4812_v25  ;;  %v4891_v16 = vld [vmem:[#allocation3 + $0x800] ss:$16 sps:$4 sm:$0xff]   ;;  %v4894_v24 = vld [vmem:[#allocation3 + $0x808] ss:$16 sps:$4 sm:$0xff]   ;;  %v4899_v25 = vld [vmem:[#allocation3 + $0x824] ss:$16 sps:$4 sm:$0xff]  }
 0x103   :  { %3318 = vmatpush1.bf16.msra.mxu0 %v4807_v26  ;;  %3662 = vmatpush1.bf16.msra.mxu1 %v4810_v27  ;;  %v4902_v26 = vld [vmem:[#allocation3 + $0x82c] ss:$16 sps:$4 sm:$0xff]   ;;  %v3926_v27 = vcombine.high %v5456_v22, %v5463_v15 }
 0x104   :  { %3319 = vmatprep.subr.bf16.mxu0 %v4815_v28  ;;  %3663 = vmatprep.subr.bf16.mxu1 %v4818_v29  ;;  %v4897_v28 = vld [vmem:[#allocation3 + $0x820] ss:$16 sps:$4 sm:$0xff]   ;;  %v4908_v29 = vld [vmem:[#allocation3 + $0x84c] ss:$16 sps:$4 sm:$0xff]  }
 0x107   :  { %3320 = vmatpush1.bf16.msra.mxu0 %v4813_v30  ;;  %3664 = vmatpush1.bf16.msra.mxu1 %v4816_v31  ;;  %v4903_v30 = vld [vmem:[#allocation3 + $0x840] ss:$16 sps:$4 sm:$0xff]   ;;  %v4906_v31 = vld [vmem:[#allocation3 + $0x848] ss:$16 sps:$4 sm:$0xff]  }
 0x108   :  { %3321 = vmatprep.subr.bf16.mxu0 %v4821_v32  ;;  %3665 = vmatprep.subr.bf16.mxu1 %v4824_v33  ;;  %v4911_v32 = vld [vmem:[#allocation3 + $0x864] ss:$16 sps:$4 sm:$0xff]   ;;  %v4914_v33 = vld [vmem:[#allocation3 + $0x86c] ss:$16 sps:$4 sm:$0xff]  }
 0x10b   :  { %3322 = vmatpush1.bf16.msra.mxu0 %v4819_v34  ;;  %3666 = vmatpush1.bf16.msra.mxu1 %v4822_v35  ;;  %v4909_v34 = vld [vmem:[#allocation3 + $0x860] ss:$16 sps:$4 sm:$0xff]   ;;  %v4912_v35 = vld [vmem:[#allocation3 + $0x868] ss:$16 sps:$4 sm:$0xff]  }
 0x10c   :  { %3323 = vmatprep.subr.bf16.mxu0 %v4827_v36  ;;  %3667 = vmatprep.subr.bf16.mxu1 %v4830_v37  ;;  %v4917_v36 = vld [vmem:[#allocation3 + $0x884] ss:$16 sps:$4 sm:$0xff]   ;;  %v4920_v37 = vld [vmem:[#allocation3 + $0x88c] ss:$16 sps:$4 sm:$0xff]  }
 0x10f   :  { %3324 = vmatpush1.bf16.msra.mxu0 %v4825_v38  ;;  %3668 = vmatpush1.bf16.msra.mxu1 %v4828_v39  ;;  %v4915_v38 = vld [vmem:[#allocation3 + $0x880] ss:$16 sps:$4 sm:$0xff]   ;;  %v4918_v39 = vld [vmem:[#allocation3 + $0x888] ss:$16 sps:$4 sm:$0xff]  }
 0x110   :  { %3325 = vmatprep.subr.bf16.mxu0 %v4833_v40  ;;  %3669 = vmatprep.subr.bf16.mxu1 %v4836_v41  ;;  %v4923_v40 = vld [vmem:[#allocation3 + $0x8a4] ss:$16 sps:$4 sm:$0xff]   ;;  %v4926_v41 = vld [vmem:[#allocation3 + $0x8ac] ss:$16 sps:$4 sm:$0xff]  }
 0x113   :  { %3326 = vmatpush1.bf16.msra.mxu0 %v4831_v42  ;;  %3670 = vmatpush1.bf16.msra.mxu1 %v4834_v43  ;;  %v4921_v42 = vld [vmem:[#allocation3 + $0x8a0] ss:$16 sps:$4 sm:$0xff]   ;;  %v4924_v43 = vld [vmem:[#allocation3 + $0x8a8] ss:$16 sps:$4 sm:$0xff]  }
 0x114   :  { %3327 = vmatprep.subr.bf16.mxu0 %v4839_v44  ;;  %3671 = vmatprep.subr.bf16.mxu1 %v4842_v45  ;;  %v4929_v44 = vld [vmem:[#allocation3 + $0x8c4] ss:$16 sps:$4 sm:$0xff]   ;;  %v4932_v45 = vld [vmem:[#allocation3 + $0x8cc] ss:$16 sps:$4 sm:$0xff]  }
 0x117   :  { %3328 = vmatpush1.bf16.msra.mxu0 %v4837_v46  ;;  %3672 = vmatpush1.bf16.msra.mxu1 %v4840_v47  ;;  %v4927_v46 = vld [vmem:[#allocation3 + $0x8c0] ss:$16 sps:$4 sm:$0xff]   ;;  %v4930_v47 = vld [vmem:[#allocation3 + $0x8c8] ss:$16 sps:$4 sm:$0xff]  }
 0x118   :  { %3329 = vmatprep.subr.bf16.mxu0 %v4845_v48  ;;  %3673 = vmatprep.subr.bf16.mxu1 %v4848_v49  ;;  %v4935_v48 = vld [vmem:[#allocation3 + $0x8e4] ss:$16 sps:$4 sm:$0xff]   ;;  %v4938_v49 = vld [vmem:[#allocation3 + $0x8ec] ss:$16 sps:$4 sm:$0xff]  }
 0x11b   :  { %3330 = vmatpush1.bf16.msra.mxu0 %v4843_v50  ;;  %3674 = vmatpush1.bf16.msra.mxu1 %v4846_v51  ;;  %v4933_v50 = vld [vmem:[#allocation3 + $0x8e0] ss:$16 sps:$4 sm:$0xff]   ;;  %v4936_v51 = vld [vmem:[#allocation3 + $0x8e8] ss:$16 sps:$4 sm:$0xff]  }
 0x11c   :  { %3331 = vmatprep.subr.bf16.mxu0 %v4851_v52  ;;  %3675 = vmatprep.subr.bf16.mxu1 %v4854_v53  ;;  %v4941_v52 = vld [vmem:[#allocation3 + $0x904] ss:$16 sps:$4 sm:$0xff]   ;;  %v4944_v53 = vld [vmem:[#allocation3 + $0x90c] ss:$16 sps:$4 sm:$0xff]  }
 0x11f   :  { %3332 = vmatpush1.bf16.msra.mxu0 %v4849_v54  ;;  %3676 = vmatpush1.bf16.msra.mxu1 %v4852_v55  ;;  %v4939_v54 = vld [vmem:[#allocation3 + $0x900] ss:$16 sps:$4 sm:$0xff]   ;;  %v4942_v55 = vld [vmem:[#allocation3 + $0x908] ss:$16 sps:$4 sm:$0xff]  }
 0x120   :  { %3333 = vmatprep.subr.bf16.mxu0 %v4857_v56  ;;  %3677 = vmatprep.subr.bf16.mxu1 %v4860_v57  ;;  %v4947_v56 = vld [vmem:[#allocation3 + $0x924] ss:$16 sps:$4 sm:$0xff]   ;;  %v4950_v57 = vld [vmem:[#allocation3 + $0x92c] ss:$16 sps:$4 sm:$0xff]  }
 0x123   :  { %3334 = vmatpush1.bf16.msra.mxu0 %v4855_v58  ;;  %3678 = vmatpush1.bf16.msra.mxu1 %v4858_v59  ;;  %v4945_v58 = vld [vmem:[#allocation3 + $0x920] ss:$16 sps:$4 sm:$0xff]   ;;  %v4948_v59 = vld [vmem:[#allocation3 + $0x928] ss:$16 sps:$4 sm:$0xff]  }
 0x124   :  { %3335 = vmatprep.subr.bf16.mxu0 %v4863_v60  ;;  %3679 = vmatprep.subr.bf16.mxu1 %v4866_v61  ;;  %v4953_v60 = vld [vmem:[#allocation3 + $0x944] ss:$16 sps:$4 sm:$0xff]   ;;  %v4956_v61 = vld [vmem:[#allocation3 + $0x94c] ss:$16 sps:$4 sm:$0xff]  }
 0x127   :  { %3336 = vmatpush1.bf16.msra.mxu0 %v4861_v62  ;;  %3680 = vmatpush1.bf16.msra.mxu1 %v4864_v63  ;;  %v4951_v62 = vld [vmem:[#allocation3 + $0x940] ss:$16 sps:$4 sm:$0xff]   ;;  %v4954_v63 = vld [vmem:[#allocation3 + $0x948] ss:$16 sps:$4 sm:$0xff]  }
 0x128   :  { %3337 = vmatprep.subr.bf16.mxu0 %v4869_v0  ;;  %3681 = vmatprep.subr.bf16.mxu1 %v4872_v1  ;;  %v4959_v0 = vld [vmem:[#allocation3 + $0x964] ss:$16 sps:$4 sm:$0xff]   ;;  %v4962_v1 = vld [vmem:[#allocation3 + $0x96c] ss:$16 sps:$4 sm:$0xff]  }
 0x12b   :  { %3338 = vmatpush1.bf16.msra.mxu0 %v4867_v2  ;;  %3682 = vmatpush1.bf16.msra.mxu1 %v4870_v3  ;;  %v4957_v2 = vld [vmem:[#allocation3 + $0x960] ss:$16 sps:$4 sm:$0xff]   ;;  %v4960_v3 = vld [vmem:[#allocation3 + $0x968] ss:$16 sps:$4 sm:$0xff]  }
 0x12c   :  { %3339 = vmatprep.subr.bf16.mxu0 %v4875_v4  ;;  %3683 = vmatprep.subr.bf16.mxu1 %v4878_v5  ;;  %v4965_v4 = vld [vmem:[#allocation3 + $0x984] ss:$16 sps:$4 sm:$0xff]   ;;  %v4968_v5 = vld [vmem:[#allocation3 + $0x98c] ss:$16 sps:$4 sm:$0xff]  }
 0x12f   :  { %3340 = vmatpush1.bf16.msra.mxu0 %v4873_v6  ;;  %3684 = vmatpush1.bf16.msra.mxu1 %v4876_v7  ;;  %v4963_v6 = vld [vmem:[#allocation3 + $0x980] ss:$16 sps:$4 sm:$0xff]   ;;  %v4966_v7 = vld [vmem:[#allocation3 + $0x988] ss:$16 sps:$4 sm:$0xff]  }
 0x130   :  { %3341 = vmatprep.subr.bf16.mxu0 %v4881_v8  ;;  %3685 = vmatprep.subr.bf16.mxu1 %v4884_v9  ;;  %v4971_v8 = vld [vmem:[#allocation3 + $0x9a4] ss:$16 sps:$4 sm:$0xff]   ;;  %v4974_v9 = vld [vmem:[#allocation3 + $0x9ac] ss:$16 sps:$4 sm:$0xff]  }
 0x133   :  { %3342 = vmatpush1.bf16.msra.mxu0 %v4879_v10  ;;  %3686 = vmatpush1.bf16.msra.mxu1 %v4882_v11  ;;  %v4969_v10 = vld [vmem:[#allocation3 + $0x9a0] ss:$16 sps:$4 sm:$0xff]   ;;  %v4972_v11 = vld [vmem:[#allocation3 + $0x9a8] ss:$16 sps:$4 sm:$0xff]  }
 0x134   :  { %3343 = vmatprep.subr.bf16.mxu0 %v4887_v12  ;;  %3687 = vmatprep.subr.bf16.mxu1 %v4890_v13  ;;  %v4977_v12 = vld [vmem:[#allocation3 + $0x9c4] ss:$16 sps:$4 sm:$0xff]   ;;  %v4980_v13 = vld [vmem:[#allocation3 + $0x9cc] ss:$16 sps:$4 sm:$0xff]  }
 0x137   :  { %3344 = vmatpush1.bf16.msra.mxu0 %v4885_v14  ;;  %3688 = vmatpush1.bf16.msra.mxu1 %v4888_v17  ;;  %v4975_v14 = vld [vmem:[#allocation3 + $0x9c0] ss:$16 sps:$4 sm:$0xff]   ;;  %v4978_v17 = vld [vmem:[#allocation3 + $0x9c8] ss:$16 sps:$4 sm:$0xff]  }
 0x138   :  { %3356 = vmatprep.subr.bf16.mxu0 %v4893_v18  ;;  %3700 = vmatprep.subr.bf16.mxu1 %v4896_v21  ;;  %v4983_v18 = vld [vmem:[#allocation3 + $0x9e4] ss:$16 sps:$4 sm:$0xff]   ;;  %v4986_v21 = vld [vmem:[#allocation3 + $0x9ec] ss:$16 sps:$4 sm:$0xff]  }
 0x13a   :  { %3346 = vmatmul.mubr.bf16.vlgmr.msra.gmra.mrb[0].mxu0 %v3923_v23  ;;  %3690 = vmatmul.mubr.bf16.vlgmr.msra.gmra.mrb[0].mxu1 %v3923_v23  ;;  %v4981_v23 = vld [vmem:[#allocation3 + $0x9e0] ss:$16 sps:$4 sm:$0xff]  }
 0x13b   :  { %3357 = vmatpush1.bf16.msra.mxu0 %v4891_v16  ;;  %3701 = vmatpush1.bf16.msra.mxu1 %v4894_v24  ;;  %v4984_v16 = vld [vmem:[#allocation3 + $0x9e8] ss:$16 sps:$4 sm:$0xff]   ;;  %v4989_v24 = vld [vmem:[#allocation3 + $0xa04] ss:$16 sps:$4 sm:$0xff]  }
 0x13c   :  { %3358 = vmatprep.subr.bf16.mxu0 %v4899_v25  ;;  %3702 = vmatprep.subr.bf16.mxu1 %v4902_v26  ;;  %v4992_v25 = vld [vmem:[#allocation3 + $0xa0c] ss:$16 sps:$4 sm:$0xff]   ;;  %v3925_v26 = vcombine.low %v5456_v22, %v5463_v15  ;;  %v4993_v15 = vld [vmem:[#allocation3 + $0xa20] ss:$16 sps:$4 sm:$0xff]  }
 0x13d   :  { %3388 = vmatprep.mubr.bf16.mxu0 %v3926_v27  ;;  %3732 = vmatprep.mubr.bf16.mxu1 %v3926_v27  ;;  %v5472_v27 = vld [vmem:[%s5517_s0 + $0x28] sm:$0xff] }
 0x13f   :  { %3359 = vmatpush1.bf16.msra.mxu0 %v4897_v28  ;;  %3703 = vmatpush1.bf16.msra.mxu1 %v4900_v19  ;;  %v5477_v28 = vld [vmem:[%s5517_s0 + $0x68] sm:$0xff]  ;;  %v4987_v19 = vld [vmem:[#allocation3 + $0xa00] ss:$16 sps:$4 sm:$0xff]  }
 0x140   :  { %3360 = vmatprep.subr.bf16.mxu0 %v4905_v20  ;;  %3704 = vmatprep.subr.bf16.mxu1 %v4908_v29  ;;  %v4990_v20 = vld [vmem:[#allocation3 + $0xa08] ss:$16 sps:$4 sm:$0xff]   ;;  %v4995_v29 = vld [vmem:[#allocation3 + $0xa24] ss:$16 sps:$4 sm:$0xff]   ;;  %v3928_v22 = vcombine.high %v5472_v27, %v5477_v28 }
 0x143   :  { %3361 = vmatpush1.bf16.msra.mxu0 %v4903_v30  ;;  %3705 = vmatpush1.bf16.msra.mxu1 %v4906_v31  ;;  %v4998_v30 = vld [vmem:[#allocation3 + $0xa2c] ss:$16 sps:$4 sm:$0xff]   ;;  %v4996_v31 = vld [vmem:[#allocation3 + $0xa28] ss:$16 sps:$4 sm:$0xff]  }
 0x144   :  { %3362 = vmatprep.subr.bf16.mxu0 %v4911_v32  ;;  %3706 = vmatprep.subr.bf16.mxu1 %v4914_v33  ;;  %v5001_v32 = vld [vmem:[#allocation3 + $0xa44] ss:$16 sps:$4 sm:$0xff]   ;;  %v5004_v33 = vld [vmem:[#allocation3 + $0xa4c] ss:$16 sps:$4 sm:$0xff]  }
 0x147   :  { %3363 = vmatpush1.bf16.msra.mxu0 %v4909_v34  ;;  %3707 = vmatpush1.bf16.msra.mxu1 %v4912_v35  ;;  %v4999_v34 = vld [vmem:[#allocation3 + $0xa40] ss:$16 sps:$4 sm:$0xff]   ;;  %v5002_v35 = vld [vmem:[#allocation3 + $0xa48] ss:$16 sps:$4 sm:$0xff]  }
 0x148   :  { %3364 = vmatprep.subr.bf16.mxu0 %v4917_v36  ;;  %3708 = vmatprep.subr.bf16.mxu1 %v4920_v37  ;;  %v5007_v36 = vld [vmem:[#allocation3 + $0xa64] ss:$16 sps:$4 sm:$0xff]   ;;  %v5010_v37 = vld [vmem:[#allocation3 + $0xa6c] ss:$16 sps:$4 sm:$0xff]  }
 0x14b   :  { %3365 = vmatpush1.bf16.msra.mxu0 %v4915_v38  ;;  %3709 = vmatpush1.bf16.msra.mxu1 %v4918_v39  ;;  %v5005_v38 = vld [vmem:[#allocation3 + $0xa60] ss:$16 sps:$4 sm:$0xff]   ;;  %v5008_v39 = vld [vmem:[#allocation3 + $0xa68] ss:$16 sps:$4 sm:$0xff]  }
 0x14c   :  { %3366 = vmatprep.subr.bf16.mxu0 %v4923_v40  ;;  %3710 = vmatprep.subr.bf16.mxu1 %v4926_v41  ;;  %v5013_v40 = vld [vmem:[#allocation3 + $0xa84] ss:$16 sps:$4 sm:$0xff]   ;;  %v5016_v41 = vld [vmem:[#allocation3 + $0xa8c] ss:$16 sps:$4 sm:$0xff]  }
 0x14f   :  { %3367 = vmatpush1.bf16.msra.mxu0 %v4921_v42  ;;  %3711 = vmatpush1.bf16.msra.mxu1 %v4924_v43  ;;  %v5011_v42 = vld [vmem:[#allocation3 + $0xa80] ss:$16 sps:$4 sm:$0xff]   ;;  %v5014_v43 = vld [vmem:[#allocation3 + $0xa88] ss:$16 sps:$4 sm:$0xff]  }
 0x150   :  { %3368 = vmatprep.subr.bf16.mxu0 %v4929_v44  ;;  %3712 = vmatprep.subr.bf16.mxu1 %v4932_v45  ;;  %v5019_v44 = vld [vmem:[#allocation3 + $0xaa4] ss:$16 sps:$4 sm:$0xff]   ;;  %v5022_v45 = vld [vmem:[#allocation3 + $0xaac] ss:$16 sps:$4 sm:$0xff]  }
 0x153   :  { %3369 = vmatpush1.bf16.msra.mxu0 %v4927_v46  ;;  %3713 = vmatpush1.bf16.msra.mxu1 %v4930_v47  ;;  %v5017_v46 = vld [vmem:[#allocation3 + $0xaa0] ss:$16 sps:$4 sm:$0xff]   ;;  %v5020_v47 = vld [vmem:[#allocation3 + $0xaa8] ss:$16 sps:$4 sm:$0xff]  }
 0x154   :  { %3370 = vmatprep.subr.bf16.mxu0 %v4935_v48  ;;  %3714 = vmatprep.subr.bf16.mxu1 %v4938_v49  ;;  %v5025_v48 = vld [vmem:[#allocation3 + $0xac4] ss:$16 sps:$4 sm:$0xff]   ;;  %v5028_v49 = vld [vmem:[#allocation3 + $0xacc] ss:$16 sps:$4 sm:$0xff]  }
 0x157   :  { %3371 = vmatpush1.bf16.msra.mxu0 %v4933_v50  ;;  %3715 = vmatpush1.bf16.msra.mxu1 %v4936_v51  ;;  %v5023_v50 = vld [vmem:[#allocation3 + $0xac0] ss:$16 sps:$4 sm:$0xff]   ;;  %v5026_v51 = vld [vmem:[#allocation3 + $0xac8] ss:$16 sps:$4 sm:$0xff]  }
 0x158   :  { %3372 = vmatprep.subr.bf16.mxu0 %v4941_v52  ;;  %3716 = vmatprep.subr.bf16.mxu1 %v4944_v53  ;;  %v5031_v52 = vld [vmem:[#allocation3 + $0xae4] ss:$16 sps:$4 sm:$0xff]   ;;  %v5034_v53 = vld [vmem:[#allocation3 + $0xaec] ss:$16 sps:$4 sm:$0xff]  }
 0x15b   :  { %3373 = vmatpush1.bf16.msra.mxu0 %v4939_v54  ;;  %3717 = vmatpush1.bf16.msra.mxu1 %v4942_v55  ;;  %v5029_v54 = vld [vmem:[#allocation3 + $0xae0] ss:$16 sps:$4 sm:$0xff]   ;;  %v5032_v55 = vld [vmem:[#allocation3 + $0xae8] ss:$16 sps:$4 sm:$0xff]  }
 0x15c   :  { %3374 = vmatprep.subr.bf16.mxu0 %v4947_v56  ;;  %3718 = vmatprep.subr.bf16.mxu1 %v4950_v57  ;;  %v5037_v56 = vld [vmem:[#allocation3 + $0xb04] ss:$16 sps:$4 sm:$0xff]   ;;  %v5040_v57 = vld [vmem:[#allocation3 + $0xb0c] ss:$16 sps:$4 sm:$0xff]  }
 0x15f   :  { %3375 = vmatpush1.bf16.msra.mxu0 %v4945_v58  ;;  %3719 = vmatpush1.bf16.msra.mxu1 %v4948_v59  ;;  %v5035_v58 = vld [vmem:[#allocation3 + $0xb00] ss:$16 sps:$4 sm:$0xff]   ;;  %v5038_v59 = vld [vmem:[#allocation3 + $0xb08] ss:$16 sps:$4 sm:$0xff]  }
 0x160   :  { %3376 = vmatprep.subr.bf16.mxu0 %v4953_v60  ;;  %3720 = vmatprep.subr.bf16.mxu1 %v4956_v61  ;;  %v5043_v60 = vld [vmem:[#allocation3 + $0xb24] ss:$16 sps:$4 sm:$0xff]   ;;  %v5046_v61 = vld [vmem:[#allocation3 + $0xb2c] ss:$16 sps:$4 sm:$0xff]  }
 0x163   :  { %3377 = vmatpush1.bf16.msra.mxu0 %v4951_v62  ;;  %3721 = vmatpush1.bf16.msra.mxu1 %v4954_v63  ;;  %v5041_v62 = vld [vmem:[#allocation3 + $0xb20] ss:$16 sps:$4 sm:$0xff]   ;;  %v5044_v63 = vld [vmem:[#allocation3 + $0xb28] ss:$16 sps:$4 sm:$0xff]  }
 0x164   :  { %3378 = vmatprep.subr.bf16.mxu0 %v4959_v0  ;;  %3722 = vmatprep.subr.bf16.mxu1 %v4962_v1  ;;  %v5049_v0 = vld [vmem:[#allocation3 + $0xb44] ss:$16 sps:$4 sm:$0xff]   ;;  %v5052_v1 = vld [vmem:[#allocation3 + $0xb4c] ss:$16 sps:$4 sm:$0xff]  }
 0x167   :  { %3379 = vmatpush1.bf16.msra.mxu0 %v4957_v2  ;;  %3723 = vmatpush1.bf16.msra.mxu1 %v4960_v3  ;;  %v5047_v2 = vld [vmem:[#allocation3 + $0xb40] ss:$16 sps:$4 sm:$0xff]   ;;  %v5050_v3 = vld [vmem:[#allocation3 + $0xb48] ss:$16 sps:$4 sm:$0xff]  }
 0x168   :  { %3380 = vmatprep.subr.bf16.mxu0 %v4965_v4  ;;  %3724 = vmatprep.subr.bf16.mxu1 %v4968_v5  ;;  %v5055_v4 = vld [vmem:[#allocation3 + $0xb64] ss:$16 sps:$4 sm:$0xff]   ;;  %v5058_v5 = vld [vmem:[#allocation3 + $0xb6c] ss:$16 sps:$4 sm:$0xff]  }
 0x16b   :  { %3381 = vmatpush1.bf16.msra.mxu0 %v4963_v6  ;;  %3725 = vmatpush1.bf16.msra.mxu1 %v4966_v7  ;;  %v5053_v6 = vld [vmem:[#allocation3 + $0xb60] ss:$16 sps:$4 sm:$0xff]   ;;  %v5056_v7 = vld [vmem:[#allocation3 + $0xb68] ss:$16 sps:$4 sm:$0xff]  }
 0x16c   :  { %3382 = vmatprep.subr.bf16.mxu0 %v4971_v8  ;;  %3726 = vmatprep.subr.bf16.mxu1 %v4974_v9  ;;  %v5061_v8 = vld [vmem:[#allocation3 + $0xb84] ss:$16 sps:$4 sm:$0xff]   ;;  %v5064_v9 = vld [vmem:[#allocation3 + $0xb8c] ss:$16 sps:$4 sm:$0xff]  }
 0x16f   :  { %3383 = vmatpush1.bf16.msra.mxu0 %v4969_v10  ;;  %3727 = vmatpush1.bf16.msra.mxu1 %v4972_v11  ;;  %v5059_v10 = vld [vmem:[#allocation3 + $0xb80] ss:$16 sps:$4 sm:$0xff]   ;;  %v5062_v11 = vld [vmem:[#allocation3 + $0xb88] ss:$16 sps:$4 sm:$0xff]  }
 0x170   :  { %3384 = vmatprep.subr.bf16.mxu0 %v4977_v12  ;;  %3728 = vmatprep.subr.bf16.mxu1 %v4980_v13  ;;  %v5067_v12 = vld [vmem:[#allocation3 + $0xba4] ss:$16 sps:$4 sm:$0xff]   ;;  %v5070_v13 = vld [vmem:[#allocation3 + $0xbac] ss:$16 sps:$4 sm:$0xff]  }
 0x173   :  { %3385 = vmatpush1.bf16.msra.mxu0 %v4975_v14  ;;  %3729 = vmatpush1.bf16.msra.mxu1 %v4978_v17  ;;  %v5065_v14 = vld [vmem:[#allocation3 + $0xba0] ss:$16 sps:$4 sm:$0xff]   ;;  %v5068_v17 = vld [vmem:[#allocation3 + $0xba8] ss:$16 sps:$4 sm:$0xff]  }
 0x174   :  { %3386 = vmatprep.subr.bf16.mxu0 %v4983_v18  ;;  %3730 = vmatprep.subr.bf16.mxu1 %v4986_v21  ;;  %v5073_v18 = vld [vmem:[#allocation3 + $0xbc4] ss:$16 sps:$4 sm:$0xff]   ;;  %v5076_v21 = vld [vmem:[#allocation3 + $0xbcc] ss:$16 sps:$4 sm:$0xff]  }
 0x177   :  { %3387 = vmatpush1.bf16.msra.mxu0 %v4981_v23  ;;  %3731 = vmatpush1.bf16.msra.mxu1 %v4984_v16  ;;  %v5071_v23 = vld [vmem:[#allocation3 + $0xbc0] ss:$16 sps:$4 sm:$0xff]   ;;  %v5074_v16 = vld [vmem:[#allocation3 + $0xbc8] ss:$16 sps:$4 sm:$0xff]  }
 0x178   :  { %3399 = vmatprep.subr.bf16.mxu0 %v4989_v24  ;;  %3743 = vmatprep.subr.bf16.mxu1 %v4992_v25  ;;  %v5079_v24 = vld [vmem:[#allocation3 + $0xbe4] ss:$16 sps:$4 sm:$0xff]   ;;  %v5082_v25 = vld [vmem:[#allocation3 + $0xbec] ss:$16 sps:$4 sm:$0xff]  }
 0x17a   :  { %3389 = vmatmul.mubr.bf16.vlgmr.msra.gmra.mrb[0].mxu0 %v3925_v26  ;;  %3733 = vmatmul.mubr.bf16.vlgmr.msra.gmra.mrb[0].mxu1 %v3925_v26  ;;  %v5077_v26 = vld [vmem:[#allocation3 + $0xbe0] ss:$16 sps:$4 sm:$0xff]  }
 0x17b   :  { %3400 = vmatpush1.bf16.msra.mxu0 %v4987_v19  ;;  %3744 = vmatpush1.bf16.msra.mxu1 %v4990_v20  ;;  %v5080_v19 = vld [vmem:[#allocation3 + $0xbe8] ss:$16 sps:$4 sm:$0xff]   ;;  %v5085_v20 = vld [vmem:[#allocation3 + $0xc04] ss:$16 sps:$4 sm:$0xff]  }
 0x17c   :  { %3401 = vmatprep.subr.bf16.mxu0 %v4995_v29  ;;  %3745 = vmatprep.subr.bf16.mxu1 %v4998_v30  ;;  %v5088_v29 = vld [vmem:[#allocation3 + $0xc0c] ss:$16 sps:$4 sm:$0xff]   ;;  %v3927_v30 = vcombine.low %v5472_v27, %v5477_v28  ;;  %v5089_v28 = vld [vmem:[#allocation3 + $0xc20] ss:$16 sps:$4 sm:$0xff]  }
 0x17d   :  { %3431 = vmatprep.mubr.bf16.mxu0 %v3928_v22  ;;  %3775 = vmatprep.mubr.bf16.mxu1 %v3928_v22  ;;  %v5486_v22 = vld [vmem:[%s5517_s0 + $0x30] sm:$0xff] }
 0x17f   :  { %3402 = vmatpush1.bf16.msra.mxu0 %v4993_v15  ;;  %3746 = vmatpush1.bf16.msra.mxu1 %v4996_v31  ;;  %v5491_v15 = vld [vmem:[%s5517_s0 + $0x70] sm:$0xff] }
 0x180   :  { %3403 = vmatprep.subr.bf16.mxu0 %v5001_v32  ;;  %3747 = vmatprep.subr.bf16.mxu1 %v5004_v33  ;;  %v5083_v31 = vld [vmem:[#allocation3 + $0xc00] ss:$16 sps:$4 sm:$0xff]   ;;  %v5086_v32 = vld [vmem:[#allocation3 + $0xc08] ss:$16 sps:$4 sm:$0xff]   ;;  %v5091_v33 = vld [vmem:[#allocation3 + $0xc24] ss:$16 sps:$4 sm:$0xff]   ;;  %v3930_v27 = vcombine.high %v5486_v22, %v5491_v15 }
 0x183   :  { %3404 = vmatpush1.bf16.msra.mxu0 %v4999_v34  ;;  %3748 = vmatpush1.bf16.msra.mxu1 %v5002_v35  ;;  %v5094_v34 = vld [vmem:[#allocation3 + $0xc2c] ss:$16 sps:$4 sm:$0xff]   ;;  %v5092_v35 = vld [vmem:[#allocation3 + $0xc28] ss:$16 sps:$4 sm:$0xff]  }
 0x184   :  { %3405 = vmatprep.subr.bf16.mxu0 %v5007_v36  ;;  %3749 = vmatprep.subr.bf16.mxu1 %v5010_v37  ;;  %v5097_v36 = vld [vmem:[#allocation3 + $0xc44] ss:$16 sps:$4 sm:$0xff]   ;;  %v5100_v37 = vld [vmem:[#allocation3 + $0xc4c] ss:$16 sps:$4 sm:$0xff]  }
 0x187   :  { %3406 = vmatpush1.bf16.msra.mxu0 %v5005_v38  ;;  %3750 = vmatpush1.bf16.msra.mxu1 %v5008_v39  ;;  %v5095_v38 = vld [vmem:[#allocation3 + $0xc40] ss:$16 sps:$4 sm:$0xff]   ;;  %v5098_v39 = vld [vmem:[#allocation3 + $0xc48] ss:$16 sps:$4 sm:$0xff]  }
 0x188   :  { %3407 = vmatprep.subr.bf16.mxu0 %v5013_v40  ;;  %3751 = vmatprep.subr.bf16.mxu1 %v5016_v41  ;;  %v5103_v40 = vld [vmem:[#allocation3 + $0xc64] ss:$16 sps:$4 sm:$0xff]   ;;  %v5106_v41 = vld [vmem:[#allocation3 + $0xc6c] ss:$16 sps:$4 sm:$0xff]  }
 0x18b   :  { %3408 = vmatpush1.bf16.msra.mxu0 %v5011_v42  ;;  %3752 = vmatpush1.bf16.msra.mxu1 %v5014_v43  ;;  %v5101_v42 = vld [vmem:[#allocation3 + $0xc60] ss:$16 sps:$4 sm:$0xff]   ;;  %v5104_v43 = vld [vmem:[#allocation3 + $0xc68] ss:$16 sps:$4 sm:$0xff]  }
 0x18c   :  { %3409 = vmatprep.subr.bf16.mxu0 %v5019_v44  ;;  %3753 = vmatprep.subr.bf16.mxu1 %v5022_v45  ;;  %v5109_v44 = vld [vmem:[#allocation3 + $0xc84] ss:$16 sps:$4 sm:$0xff]   ;;  %v5112_v45 = vld [vmem:[#allocation3 + $0xc8c] ss:$16 sps:$4 sm:$0xff]  }
 0x18f   :  { %3410 = vmatpush1.bf16.msra.mxu0 %v5017_v46  ;;  %3754 = vmatpush1.bf16.msra.mxu1 %v5020_v47  ;;  %v5107_v46 = vld [vmem:[#allocation3 + $0xc80] ss:$16 sps:$4 sm:$0xff]   ;;  %v5110_v47 = vld [vmem:[#allocation3 + $0xc88] ss:$16 sps:$4 sm:$0xff]  }
 0x190   :  { %3411 = vmatprep.subr.bf16.mxu0 %v5025_v48  ;;  %3755 = vmatprep.subr.bf16.mxu1 %v5028_v49  ;;  %v5115_v48 = vld [vmem:[#allocation3 + $0xca4] ss:$16 sps:$4 sm:$0xff]   ;;  %v5118_v49 = vld [vmem:[#allocation3 + $0xcac] ss:$16 sps:$4 sm:$0xff]  }
 0x193   :  { %3412 = vmatpush1.bf16.msra.mxu0 %v5023_v50  ;;  %3756 = vmatpush1.bf16.msra.mxu1 %v5026_v51  ;;  %v5113_v50 = vld [vmem:[#allocation3 + $0xca0] ss:$16 sps:$4 sm:$0xff]   ;;  %v5116_v51 = vld [vmem:[#allocation3 + $0xca8] ss:$16 sps:$4 sm:$0xff]  }
 0x194   :  { %3413 = vmatprep.subr.bf16.mxu0 %v5031_v52  ;;  %3757 = vmatprep.subr.bf16.mxu1 %v5034_v53  ;;  %v5121_v52 = vld [vmem:[#allocation3 + $0xcc4] ss:$16 sps:$4 sm:$0xff]   ;;  %v5124_v53 = vld [vmem:[#allocation3 + $0xccc] ss:$16 sps:$4 sm:$0xff]  }
 0x197   :  { %3414 = vmatpush1.bf16.msra.mxu0 %v5029_v54  ;;  %3758 = vmatpush1.bf16.msra.mxu1 %v5032_v55  ;;  %v5119_v54 = vld [vmem:[#allocation3 + $0xcc0] ss:$16 sps:$4 sm:$0xff]   ;;  %v5122_v55 = vld [vmem:[#allocation3 + $0xcc8] ss:$16 sps:$4 sm:$0xff]  }
 0x198   :  { %3415 = vmatprep.subr.bf16.mxu0 %v5037_v56  ;;  %3759 = vmatprep.subr.bf16.mxu1 %v5040_v57  ;;  %v5127_v56 = vld [vmem:[#allocation3 + $0xce4] ss:$16 sps:$4 sm:$0xff]   ;;  %v5130_v57 = vld [vmem:[#allocation3 + $0xcec] ss:$16 sps:$4 sm:$0xff]  }
 0x19b   :  { %3416 = vmatpush1.bf16.msra.mxu0 %v5035_v58  ;;  %3760 = vmatpush1.bf16.msra.mxu1 %v5038_v59  ;;  %v5125_v58 = vld [vmem:[#allocation3 + $0xce0] ss:$16 sps:$4 sm:$0xff]   ;;  %v5128_v59 = vld [vmem:[#allocation3 + $0xce8] ss:$16 sps:$4 sm:$0xff]  }
 0x19c   :  { %3417 = vmatprep.subr.bf16.mxu0 %v5043_v60  ;;  %3761 = vmatprep.subr.bf16.mxu1 %v5046_v61  ;;  %v5133_v60 = vld [vmem:[#allocation3 + $0xd04] ss:$16 sps:$4 sm:$0xff]   ;;  %v5136_v61 = vld [vmem:[#allocation3 + $0xd0c] ss:$16 sps:$4 sm:$0xff]  }
 0x19f   :  { %3418 = vmatpush1.bf16.msra.mxu0 %v5041_v62  ;;  %3762 = vmatpush1.bf16.msra.mxu1 %v5044_v63  ;;  %v5131_v62 = vld [vmem:[#allocation3 + $0xd00] ss:$16 sps:$4 sm:$0xff]   ;;  %v5134_v63 = vld [vmem:[#allocation3 + $0xd08] ss:$16 sps:$4 sm:$0xff]  }
 0x1a0   :  { %3419 = vmatprep.subr.bf16.mxu0 %v5049_v0  ;;  %3763 = vmatprep.subr.bf16.mxu1 %v5052_v1  ;;  %v5139_v0 = vld [vmem:[#allocation3 + $0xd24] ss:$16 sps:$4 sm:$0xff]   ;;  %v5142_v1 = vld [vmem:[#allocation3 + $0xd2c] ss:$16 sps:$4 sm:$0xff]  }
 0x1a3   :  { %3420 = vmatpush1.bf16.msra.mxu0 %v5047_v2  ;;  %3764 = vmatpush1.bf16.msra.mxu1 %v5050_v3  ;;  %v5137_v2 = vld [vmem:[#allocation3 + $0xd20] ss:$16 sps:$4 sm:$0xff]   ;;  %v5140_v3 = vld [vmem:[#allocation3 + $0xd28] ss:$16 sps:$4 sm:$0xff]  }
 0x1a4   :  { %3421 = vmatprep.subr.bf16.mxu0 %v5055_v4  ;;  %3765 = vmatprep.subr.bf16.mxu1 %v5058_v5  ;;  %v5145_v4 = vld [vmem:[#allocation3 + $0xd44] ss:$16 sps:$4 sm:$0xff]   ;;  %v5148_v5 = vld [vmem:[#allocation3 + $0xd4c] ss:$16 sps:$4 sm:$0xff]  }
 0x1a7   :  { %3422 = vmatpush1.bf16.msra.mxu0 %v5053_v6  ;;  %3766 = vmatpush1.bf16.msra.mxu1 %v5056_v7  ;;  %v5143_v6 = vld [vmem:[#allocation3 + $0xd40] ss:$16 sps:$4 sm:$0xff]   ;;  %v5146_v7 = vld [vmem:[#allocation3 + $0xd48] ss:$16 sps:$4 sm:$0xff]  }
 0x1a8   :  { %3423 = vmatprep.subr.bf16.mxu0 %v5061_v8  ;;  %3767 = vmatprep.subr.bf16.mxu1 %v5064_v9  ;;  %v5151_v8 = vld [vmem:[#allocation3 + $0xd64] ss:$16 sps:$4 sm:$0xff]   ;;  %v5154_v9 = vld [vmem:[#allocation3 + $0xd6c] ss:$16 sps:$4 sm:$0xff]  }
 0x1ab   :  { %3424 = vmatpush1.bf16.msra.mxu0 %v5059_v10  ;;  %3768 = vmatpush1.bf16.msra.mxu1 %v5062_v11  ;;  %v5149_v10 = vld [vmem:[#allocation3 + $0xd60] ss:$16 sps:$4 sm:$0xff]   ;;  %v5152_v11 = vld [vmem:[#allocation3 + $0xd68] ss:$16 sps:$4 sm:$0xff]  }
 0x1ac   :  { %3425 = vmatprep.subr.bf16.mxu0 %v5067_v12  ;;  %3769 = vmatprep.subr.bf16.mxu1 %v5070_v13  ;;  %v5157_v12 = vld [vmem:[#allocation3 + $0xd84] ss:$16 sps:$4 sm:$0xff]   ;;  %v5160_v13 = vld [vmem:[#allocation3 + $0xd8c] ss:$16 sps:$4 sm:$0xff]  }
 0x1af   :  { %3426 = vmatpush1.bf16.msra.mxu0 %v5065_v14  ;;  %3770 = vmatpush1.bf16.msra.mxu1 %v5068_v17  ;;  %v5155_v14 = vld [vmem:[#allocation3 + $0xd80] ss:$16 sps:$4 sm:$0xff]   ;;  %v5158_v17 = vld [vmem:[#allocation3 + $0xd88] ss:$16 sps:$4 sm:$0xff]  }
 0x1b0   :  { %3427 = vmatprep.subr.bf16.mxu0 %v5073_v18  ;;  %3771 = vmatprep.subr.bf16.mxu1 %v5076_v21  ;;  %v5163_v18 = vld [vmem:[#allocation3 + $0xda4] ss:$16 sps:$4 sm:$0xff]   ;;  %v5166_v21 = vld [vmem:[#allocation3 + $0xdac] ss:$16 sps:$4 sm:$0xff]  }
 0x1b3   :  { %3428 = vmatpush1.bf16.msra.mxu0 %v5071_v23  ;;  %3772 = vmatpush1.bf16.msra.mxu1 %v5074_v16  ;;  %v5161_v23 = vld [vmem:[#allocation3 + $0xda0] ss:$16 sps:$4 sm:$0xff]   ;;  %v5164_v16 = vld [vmem:[#allocation3 + $0xda8] ss:$16 sps:$4 sm:$0xff]  }
 0x1b4   :  { %3429 = vmatprep.subr.bf16.mxu0 %v5079_v24  ;;  %3773 = vmatprep.subr.bf16.mxu1 %v5082_v25  ;;  %v5169_v24 = vld [vmem:[#allocation3 + $0xdc4] ss:$16 sps:$4 sm:$0xff]   ;;  %v5172_v25 = vld [vmem:[#allocation3 + $0xdcc] ss:$16 sps:$4 sm:$0xff]  }
 0x1b7   :  { %3430 = vmatpush1.bf16.msra.mxu0 %v5077_v26  ;;  %3774 = vmatpush1.bf16.msra.mxu1 %v5080_v19  ;;  %v5167_v26 = vld [vmem:[#allocation3 + $0xdc0] ss:$16 sps:$4 sm:$0xff]   ;;  %v5170_v19 = vld [vmem:[#allocation3 + $0xdc8] ss:$16 sps:$4 sm:$0xff]  }
 0x1b8   :  { %3442 = vmatprep.subr.bf16.mxu0 %v5085_v20  ;;  %3786 = vmatprep.subr.bf16.mxu1 %v5088_v29  ;;  %v5175_v20 = vld [vmem:[#allocation3 + $0xde4] ss:$16 sps:$4 sm:$0xff]   ;;  %v5178_v29 = vld [vmem:[#allocation3 + $0xdec] ss:$16 sps:$4 sm:$0xff]  }
 0x1ba   :  { %3432 = vmatmul.mubr.bf16.vlgmr.msra.gmra.mrb[0].mxu0 %v3927_v30  ;;  %3776 = vmatmul.mubr.bf16.vlgmr.msra.gmra.mrb[0].mxu1 %v3927_v30  ;;  %v5173_v30 = vld [vmem:[#allocation3 + $0xde0] ss:$16 sps:$4 sm:$0xff]  }
 0x1bb   :  { %3443 = vmatpush1.bf16.msra.mxu0 %v5083_v31  ;;  %3787 = vmatpush1.bf16.msra.mxu1 %v5086_v32  ;;  %v5176_v31 = vld [vmem:[#allocation3 + $0xde8] ss:$16 sps:$4 sm:$0xff]   ;;  %v5181_v32 = vld [vmem:[#allocation3 + $0xe04] ss:$16 sps:$4 sm:$0xff]  }
 0x1bc   :  { %3444 = vmatprep.subr.bf16.mxu0 %v5091_v33  ;;  %3788 = vmatprep.subr.bf16.mxu1 %v5094_v34  ;;  %v5184_v33 = vld [vmem:[#allocation3 + $0xe0c] ss:$16 sps:$4 sm:$0xff]   ;;  %v3929_v34 = vcombine.low %v5486_v22, %v5491_v15  ;;  %v5185_v15 = vld [vmem:[#allocation3 + $0xe20] ss:$16 sps:$4 sm:$0xff]  }
 0x1bd   :  { %3474 = vmatprep.mubr.bf16.mxu0 %v3930_v27  ;;  %3818 = vmatprep.mubr.bf16.mxu1 %v3930_v27  ;;  %v5500_v27 = vld [vmem:[%s5517_s0 + $0x38] sm:$0xff] }
 0x1bf   :  { %3445 = vmatpush1.bf16.msra.mxu0 %v5089_v28  ;;  %3789 = vmatpush1.bf16.msra.mxu1 %v5092_v35  ;;  %v5505_v28 = vld [vmem:[%s5517_s0 + $0x78] sm:$0xff]  ;;  %v5179_v35 = vld [vmem:[#allocation3 + $0xe00] ss:$16 sps:$4 sm:$0xff]  }
 0x1c0   :  { %3446 = vmatprep.subr.bf16.mxu0 %v5097_v36  ;;  %3790 = vmatprep.subr.bf16.mxu1 %v5100_v37  ;;  %v5182_v36 = vld [vmem:[#allocation3 + $0xe08] ss:$16 sps:$4 sm:$0xff]   ;;  %v5187_v37 = vld [vmem:[#allocation3 + $0xe24] ss:$16 sps:$4 sm:$0xff]   ;;  %v3932_v22 = vcombine.high %v5500_v27, %v5505_v28 }
 0x1c3   :  { %3447 = vmatpush1.bf16.msra.mxu0 %v5095_v38  ;;  %3791 = vmatpush1.bf16.msra.mxu1 %v5098_v39  ;;  %v5190_v38 = vld [vmem:[#allocation3 + $0xe2c] ss:$16 sps:$4 sm:$0xff]   ;;  %v5188_v39 = vld [vmem:[#allocation3 + $0xe28] ss:$16 sps:$4 sm:$0xff]  }
 0x1c4   :  { %3448 = vmatprep.subr.bf16.mxu0 %v5103_v40  ;;  %3792 = vmatprep.subr.bf16.mxu1 %v5106_v41  ;;  %v5193_v40 = vld [vmem:[#allocation3 + $0xe44] ss:$16 sps:$4 sm:$0xff]   ;;  %v5196_v41 = vld [vmem:[#allocation3 + $0xe4c] ss:$16 sps:$4 sm:$0xff]  }
 0x1c7   :  { %3449 = vmatpush1.bf16.msra.mxu0 %v5101_v42  ;;  %3793 = vmatpush1.bf16.msra.mxu1 %v5104_v43  ;;  %v5191_v42 = vld [vmem:[#allocation3 + $0xe40] ss:$16 sps:$4 sm:$0xff]   ;;  %v5194_v43 = vld [vmem:[#allocation3 + $0xe48] ss:$16 sps:$4 sm:$0xff]  }
 0x1c8   :  { %3450 = vmatprep.subr.bf16.mxu0 %v5109_v44  ;;  %3794 = vmatprep.subr.bf16.mxu1 %v5112_v45  ;;  %v5199_v44 = vld [vmem:[#allocation3 + $0xe64] ss:$16 sps:$4 sm:$0xff]   ;;  %v5202_v45 = vld [vmem:[#allocation3 + $0xe6c] ss:$16 sps:$4 sm:$0xff]  }
 0x1cb   :  { %3451 = vmatpush1.bf16.msra.mxu0 %v5107_v46  ;;  %3795 = vmatpush1.bf16.msra.mxu1 %v5110_v47  ;;  %v5197_v46 = vld [vmem:[#allocation3 + $0xe60] ss:$16 sps:$4 sm:$0xff]   ;;  %v5200_v47 = vld [vmem:[#allocation3 + $0xe68] ss:$16 sps:$4 sm:$0xff]  }
 0x1cc   :  { %3452 = vmatprep.subr.bf16.mxu0 %v5115_v48  ;;  %3796 = vmatprep.subr.bf16.mxu1 %v5118_v49  ;;  %v5205_v48 = vld [vmem:[#allocation3 + $0xe84] ss:$16 sps:$4 sm:$0xff]   ;;  %v5208_v49 = vld [vmem:[#allocation3 + $0xe8c] ss:$16 sps:$4 sm:$0xff]  }
 0x1cf   :  { %3453 = vmatpush1.bf16.msra.mxu0 %v5113_v50  ;;  %3797 = vmatpush1.bf16.msra.mxu1 %v5116_v51  ;;  %v5203_v50 = vld [vmem:[#allocation3 + $0xe80] ss:$16 sps:$4 sm:$0xff]   ;;  %v5206_v51 = vld [vmem:[#allocation3 + $0xe88] ss:$16 sps:$4 sm:$0xff]  }
 0x1d0   :  { %3454 = vmatprep.subr.bf16.mxu0 %v5121_v52  ;;  %3798 = vmatprep.subr.bf16.mxu1 %v5124_v53  ;;  %v5211_v52 = vld [vmem:[#allocation3 + $0xea4] ss:$16 sps:$4 sm:$0xff]   ;;  %v5214_v53 = vld [vmem:[#allocation3 + $0xeac] ss:$16 sps:$4 sm:$0xff]  }
 0x1d3   :  { %3455 = vmatpush1.bf16.msra.mxu0 %v5119_v54  ;;  %3799 = vmatpush1.bf16.msra.mxu1 %v5122_v55  ;;  %v5209_v54 = vld [vmem:[#allocation3 + $0xea0] ss:$16 sps:$4 sm:$0xff]   ;;  %v5212_v55 = vld [vmem:[#allocation3 + $0xea8] ss:$16 sps:$4 sm:$0xff]  }
 0x1d4   :  { %3456 = vmatprep.subr.bf16.mxu0 %v5127_v56  ;;  %3800 = vmatprep.subr.bf16.mxu1 %v5130_v57  ;;  %v5217_v56 = vld [vmem:[#allocation3 + $0xec4] ss:$16 sps:$4 sm:$0xff]   ;;  %v5220_v57 = vld [vmem:[#allocation3 + $0xecc] ss:$16 sps:$4 sm:$0xff]  }
 0x1d7   :  { %3457 = vmatpush1.bf16.msra.mxu0 %v5125_v58  ;;  %3801 = vmatpush1.bf16.msra.mxu1 %v5128_v59  ;;  %v5215_v58 = vld [vmem:[#allocation3 + $0xec0] ss:$16 sps:$4 sm:$0xff]   ;;  %v5218_v59 = vld [vmem:[#allocation3 + $0xec8] ss:$16 sps:$4 sm:$0xff]  }
 0x1d8   :  { %3458 = vmatprep.subr.bf16.mxu0 %v5133_v60  ;;  %3802 = vmatprep.subr.bf16.mxu1 %v5136_v61  ;;  %v5223_v60 = vld [vmem:[#allocation3 + $0xee4] ss:$16 sps:$4 sm:$0xff]   ;;  %v5226_v61 = vld [vmem:[#allocation3 + $0xeec] ss:$16 sps:$4 sm:$0xff]  }
 0x1db   :  { %3459 = vmatpush1.bf16.msra.mxu0 %v5131_v62  ;;  %3803 = vmatpush1.bf16.msra.mxu1 %v5134_v63  ;;  %v5221_v62 = vld [vmem:[#allocation3 + $0xee0] ss:$16 sps:$4 sm:$0xff]   ;;  %v5224_v63 = vld [vmem:[#allocation3 + $0xee8] ss:$16 sps:$4 sm:$0xff]  }
 0x1dc   :  { %3460 = vmatprep.subr.bf16.mxu0 %v5139_v0  ;;  %3804 = vmatprep.subr.bf16.mxu1 %v5142_v1  ;;  %v5229_v0 = vld [vmem:[#allocation3 + $0xf04] ss:$16 sps:$4 sm:$0xff]   ;;  %v5232_v1 = vld [vmem:[#allocation3 + $0xf0c] ss:$16 sps:$4 sm:$0xff]  }
 0x1df   :  { %3461 = vmatpush1.bf16.msra.mxu0 %v5137_v2  ;;  %3805 = vmatpush1.bf16.msra.mxu1 %v5140_v3  ;;  %v5227_v2 = vld [vmem:[#allocation3 + $0xf00] ss:$16 sps:$4 sm:$0xff]   ;;  %v5230_v3 = vld [vmem:[#allocation3 + $0xf08] ss:$16 sps:$4 sm:$0xff]  }
 0x1e0   :  { %3462 = vmatprep.subr.bf16.mxu0 %v5145_v4  ;;  %3806 = vmatprep.subr.bf16.mxu1 %v5148_v5  ;;  %v5235_v4 = vld [vmem:[#allocation3 + $0xf24] ss:$16 sps:$4 sm:$0xff]   ;;  %v5238_v5 = vld [vmem:[#allocation3 + $0xf2c] ss:$16 sps:$4 sm:$0xff]  }
 0x1e3   :  { %3463 = vmatpush1.bf16.msra.mxu0 %v5143_v6  ;;  %3807 = vmatpush1.bf16.msra.mxu1 %v5146_v7  ;;  %v5233_v6 = vld [vmem:[#allocation3 + $0xf20] ss:$16 sps:$4 sm:$0xff]   ;;  %v5236_v7 = vld [vmem:[#allocation3 + $0xf28] ss:$16 sps:$4 sm:$0xff]  }
 0x1e4   :  { %3464 = vmatprep.subr.bf16.mxu0 %v5151_v8  ;;  %3808 = vmatprep.subr.bf16.mxu1 %v5154_v9  ;;  %v5241_v8 = vld [vmem:[#allocation3 + $0xf44] ss:$16 sps:$4 sm:$0xff]   ;;  %v5244_v9 = vld [vmem:[#allocation3 + $0xf4c] ss:$16 sps:$4 sm:$0xff]  }
 0x1e7   :  { %3465 = vmatpush1.bf16.msra.mxu0 %v5149_v10  ;;  %3809 = vmatpush1.bf16.msra.mxu1 %v5152_v11  ;;  %v572_v10 = vld [vmem:[#allocation3 + $0xf80] sm:$0x11]  ;;  %v573_v11 = vld [vmem:[#allocation3 + $0xf88] sm:$0x11] }
 0x1e8   :  { %3466 = vmatprep.subr.bf16.mxu0 %v5157_v12  ;;  %3810 = vmatprep.subr.bf16.mxu1 %v5160_v13  ;;  %v5239_v12 = vld [vmem:[#allocation3 + $0xf40] ss:$16 sps:$4 sm:$0xff]   ;;  %v5242_v13 = vld [vmem:[#allocation3 + $0xf48] ss:$16 sps:$4 sm:$0xff]  }
 0x1eb   :  { %3467 = vmatpush1.bf16.msra.mxu0 %v5155_v14  ;;  %3811 = vmatpush1.bf16.msra.mxu1 %v5158_v17  ;;  %v5247_v14 = vld [vmem:[#allocation3 + $0xf64] ss:$16 sps:$4 sm:$0xff]   ;;  %v5250_v17 = vld [vmem:[#allocation3 + $0xf6c] ss:$16 sps:$4 sm:$0xff]  }
 0x1ec   :  { %3468 = vmatprep.subr.bf16.mxu0 %v5163_v18  ;;  %3812 = vmatprep.subr.bf16.mxu1 %v5166_v21  ;;  %v4430_v18 = vcombine.high %v572_v10, %v572_v10  ;;  %v4432_v21 = vcombine.high %v573_v11, %v573_v11 }
 0x1ef   :  { %3469 = vmatpush1.bf16.msra.mxu0 %v5161_v23  ;;  %3813 = vmatpush1.bf16.msra.mxu1 %v5164_v16  ;;  %v5330_v23 = vmov 0  }
 0x1f0   :  { %3470 = vmatprep.subr.bf16.mxu0 %v5169_v24  ;;  %3814 = vmatprep.subr.bf16.mxu1 %v5172_v25  ;;  %v3171_v16 = vsel %vm3169_vm1, 65535, %v5330_v23  ;;  %v5245_v24 = vld [vmem:[#allocation3 + $0xf60] ss:$16 sps:$4 sm:$0xff]   ;;  %v5248_v25 = vld [vmem:[#allocation3 + $0xf68] ss:$16 sps:$4 sm:$0xff]  }
 0x1f3   :  { %3471 = vmatpush1.bf16.msra.mxu0 %v5167_v26  ;;  %3815 = vmatpush1.bf16.msra.mxu1 %v5170_v19  ;;  %v4429_v26 = vcombine.low %v572_v10, %v572_v10  ;;  %v4431_v19 = vcombine.low %v573_v11, %v573_v11 }
 0x1f4   :  { %3472 = vmatprep.subr.bf16.mxu0 %v5175_v20  ;;  %3816 = vmatprep.subr.bf16.mxu1 %v5178_v29  ;;  %v3176_v20 = vand.u32 %v4430_v18, %v3171_v16  ;;  %v3182_v29 = vand.u32 %v4432_v21, %v3171_v16 }
 0x1f7   :  { %3473 = vmatpush1.bf16.msra.mxu0 %v5173_v30  ;;  %3817 = vmatpush1.bf16.msra.mxu1 %v5176_v31  ;;  %v3173_v30 = vand.u32 %v4429_v26, %v3171_v16  ;;  %v3179_v31 = vand.u32 %v4431_v19, %v3171_v16 }
 0x1f8   :  { %3485 = vmatprep.subr.bf16.mxu0 %v5181_v32  ;;  %3829 = vmatprep.subr.bf16.mxu1 %v5184_v33  ;;  %v3931_v32 = vcombine.low %v5500_v27, %v5505_v28  ;;  %v576_v33 = vlaneseq }
 0x1fa   :  { %3475 = vmatmul.mubr.bf16.vlgmr.msra.gmra.mrb[0].mxu0 %v3929_v34  ;;  %3819 = vmatmul.mubr.bf16.vlgmr.msra.gmra.mrb[0].mxu1 %v3929_v34  ;;  %v577_v34 = vshrl.u32 %v576_v33, 7 }
 0x1fb   :  { %3486 = vmatpush1.bf16.msra.mxu0 %v5179_v35  ;;  %3830 = vmatpush1.bf16.msra.mxu1 %v5182_v36 }
 0x1fc   :  { %3487 = vmatprep.subr.bf16.mxu0 %v5187_v37  ;;  %3831 = vmatprep.subr.bf16.mxu1 %v5190_v38  ;;  %v578_v35 = vsub.s32 0, %v577_v34  ;;  %v586_v36 = vsub.s32 2, %v577_v34  ;;  %v574_v37 = vld [vmem:[#allocation5] sm:$0xf]  ;;  %v582_v38 = vsub.s32 1, %v577_v34 }
 0x1fd   :  { %4433 = vmatprep.mubr.msk.bf16.mxu0 %vm3165_vm0, %v3932_v22  ;;  %4434 = vmatprep.mubr.msk.bf16.mxu1 %vm3165_vm0, %v3932_v22  ;;  %v590_v22 = vsub.s32 3, %v577_v34 }
 0x1ff   :  { %3488 = vmatpush1.bf16.msra.mxu0 %v5185_v15  ;;  %3832 = vmatpush1.bf16.msra.mxu1 %v5188_v39  ;;  %v579_v15 = vrot.slane %v574_v37, %v578_v35  ;;  %v587_v39 = vrot.slane %v574_v37, %v586_v36 }
 0x200   :  { %3489 = vmatprep.subr.bf16.mxu0 %v5193_v40  ;;  %3833 = vmatprep.subr.bf16.mxu1 %v5196_v41  ;;  %v583_v40 = vrot.slane %v574_v37, %v582_v38  ;;  %v591_v41 = vrot.slane %v574_v37, %v590_v22 }
 0x203   :  { %3490 = vmatpush1.bf16.msra.mxu0 %v5191_v42  ;;  %3834 = vmatpush1.bf16.msra.mxu1 %v5194_v43 }
 0x204   :  { %3491 = vmatprep.subr.bf16.mxu0 %v5199_v44  ;;  %3835 = vmatprep.subr.bf16.mxu1 %v5202_v45 }
 0x207   :  { %3492 = vmatpush1.bf16.msra.mxu0 %v5197_v46  ;;  %3836 = vmatpush1.bf16.msra.mxu1 %v5200_v47 }
 0x208   :  { %3493 = vmatprep.subr.bf16.mxu0 %v5205_v48  ;;  %3837 = vmatprep.subr.bf16.mxu1 %v5208_v49 }
 0x20b   :  { %3494 = vmatpush1.bf16.msra.mxu0 %v5203_v50  ;;  %3838 = vmatpush1.bf16.msra.mxu1 %v5206_v51 }
 0x20c   :  { %3495 = vmatprep.subr.bf16.mxu0 %v5211_v52  ;;  %3839 = vmatprep.subr.bf16.mxu1 %v5214_v53 }
 0x20f   :  { %3496 = vmatpush1.bf16.msra.mxu0 %v5209_v54  ;;  %3840 = vmatpush1.bf16.msra.mxu1 %v5212_v55 }
 0x210   :  { %3497 = vmatprep.subr.bf16.mxu0 %v5217_v56  ;;  %3841 = vmatprep.subr.bf16.mxu1 %v5220_v57 }
 0x213   :  { %3498 = vmatpush1.bf16.msra.mxu0 %v5215_v58  ;;  %3842 = vmatpush1.bf16.msra.mxu1 %v5218_v59 }
 0x214   :  { %3499 = vmatprep.subr.bf16.mxu0 %v5223_v60  ;;  %3843 = vmatprep.subr.bf16.mxu1 %v5226_v61 }
 0x217   :  { %3500 = vmatpush1.bf16.msra.mxu0 %v5221_v62  ;;  %3844 = vmatpush1.bf16.msra.mxu1 %v5224_v63 }
 0x218   :  { %3501 = vmatprep.subr.bf16.mxu0 %v5229_v0  ;;  %3845 = vmatprep.subr.bf16.mxu1 %v5232_v1 }
 0x21b   :  { %3502 = vmatpush1.bf16.msra.mxu0 %v5227_v2  ;;  %3846 = vmatpush1.bf16.msra.mxu1 %v5230_v3  ;;  %v4435_v2 = vld [vmem:[#allocation7] ss:$0 sm:$0xff] }
 0x21c   :  { %3503 = vmatprep.subr.bf16.mxu0 %v5235_v4  ;;  %3847 = vmatprep.subr.bf16.mxu1 %v5238_v5 }
 0x21f   :  { %3504 = vmatpush1.bf16.msra.mxu0 %v5233_v6  ;;  %3848 = vmatpush1.bf16.msra.mxu1 %v5236_v7 }
 0x220   :  { %3505 = vmatprep.subr.bf16.mxu0 %v5241_v8  ;;  %3849 = vmatprep.subr.bf16.mxu1 %v5244_v9  ;;  %v4436_v9 = vld [vmem:[#allocation2] ss:$0 sm:$0xff] }
 0x223   :  { %3506 = vmatpush1.bf16.msra.mxu0 %v5239_v12  ;;  %3850 = vmatpush1.bf16.msra.mxu1 %v5242_v13 }
 0x224   :  { %3507 = vmatprep.subr.bf16.mxu0 %v5247_v14  ;;  %3851 = vmatprep.subr.bf16.mxu1 %v5250_v17 }
 0x227   :  { %3508 = vmatpush1.bf16.msra.mxu0 %v5245_v24  ;;  %3852 = vmatpush1.bf16.msra.mxu1 %v5248_v25 }
 0x228   :  { %3509 = vmatprep.subr.bf16.mxu0 %v3176_v20  ;;  %3853 = vmatprep.subr.bf16.mxu1 %v3182_v29 }
 0x22b   :  { %3510 = vmatpush1.bf16.msra.mxu0 %v3173_v30  ;;  %3854 = vmatpush1.bf16.msra.mxu1 %v3179_v31 }
 0x22e   :  { %3518 = vmatmul.mubr.bf16.vlgmr.msra.gmra.mrb[0].mxu0 %v3931_v32  ;;  %3862 = vmatmul.mubr.bf16.vlgmr.msra.gmra.mrb[0].mxu1 %v3931_v32 }
 0x301   :  { %v3519_v42 = vpop.f32.mrb[0].mxu0  ;;  %v3863_v43 = vpop.f32.mrb[0].mxu1 }
 0x302   :  { %v4437_v44 = vadd.f32 %v3519_v42, %v579_v15  ;;  %v4441_v45 = vadd.f32 %v3863_v43, %v587_v39  ;;  %v3521_v27 = vpop.f32.mrb[1].mxu0  ;;  %v3865_v28 = vpop.f32.mrb[1].mxu1 }
 0x303   :  { %v4438_v46 = vadd.f32 %v3521_v27, %v583_v40  ;;  %v4442_v47 = vadd.f32 %v3865_v28, %v591_v41  ;;  %v3523_v48 = vpop.f32.mrb[2].mxu0  ;;  %v3867_v49 = vpop.f32.mrb[2].mxu1 }
 0x304   :  { %v3872_v50 = vmax.f32 %v4437_v44, 0.0  ;;  %v3874_v51 = vmax.f32 %v4441_v45, 0.0  ;;  %v4439_v52 = vadd.f32 %v3523_v48, %v579_v15  ;;  %v4443_v53 = vadd.f32 %v3867_v49, %v587_v39  ;;  %v3525_v54 = vpop.f32.mrb[3].mxu0  ;;  %v3869_v55 = vpop.f32.mrb[3].mxu1 }
 0x305   :  { %v3873_v56 = vmax.f32 %v4438_v46, 0.0  ;;  %v3875_v57 = vmax.f32 %v4442_v47, 0.0  ;;  %v4440_v58 = vadd.f32 %v3525_v54, %v583_v40  ;;  %v4444_v59 = vadd.f32 %v3869_v55, %v591_v41 }
 0x306   :  { %v3876_v60 = vmax.f32 %v4439_v52, 0.0  ;;  %v3878_v61 = vmax.f32 %v4443_v53, 0.0 }
 0x307   :  { %v3880_v62 = vmax.f32 %v3872_v50, %v3873_v56  ;;  %v3882_v63 = vmax.f32 %v3874_v51, %v3875_v57  ;;  %v3877_v0 = vmax.f32 %v4440_v58, 0.0  ;;  %v3879_v1 = vmax.f32 %v4444_v59, 0.0 }
 0x309   :  { %v3881_v3 = vmax.f32 %v3876_v60, %v3877_v0  ;;  %v3883_v4 = vmax.f32 %v3878_v61, %v3879_v1  ;;  %v3884_v5 = vmax.f32 %v3880_v62, %v3882_v63 }
 0x30b   :  { %v3893_v6 = vmul.f32 %v4435_v2, %v3884_v5  ;;  %v3885_v7 = vmax.f32 %v3881_v3, %v3883_v4 }
 0x30d   :  { %3895 = vadd.xlane.f32.xlu0 %v3893_v6  ;;  %v3894_v8 = vmul.f32 %v4435_v2, %v3885_v7 }
 0x311   :  { %3897 = vadd.xlane.f32.xlu0 %v3894_v8 }
 0x39a   :  { %v3896_v10 = vpop.xlane.xlu0 %3895 }
 0x39b   :  { %v3906_v11 = vadd.f32 %v4436_v9, %v3896_v10 }
 0x39d   :  { %3909 = vst.msk [vmem:[%s5522_s5] sm:$0xff] %vm3908_vm2, %v3906_v11 }
 0x39e   :  { %v3898_v12 = vpop.xlane.xlu0 %3897 }
 0x39f   :  { %v3907_v13 = vadd.f32 %v4436_v9, %v3898_v12 }
 0x3a1   :  { %3910 = vst.msk [vmem:[%s5522_s5 + $0x8] sm:$0xff] %vm3908_vm2, %v3907_v13 }
 0x3a2   :  { %3915 = vsyncpa [#allocation4], 1 }
 0x3a3   :  { %3916 = vsyncpa [#allocation6], 1 }

</bundles_post_ra>
